<compile_context>
chip_gen: v7x
topology: tpu7x:2x2x1
jax: 0.10.0
libtpu: 0.0.40
codegen_flags: <defaults>
</compile_context>

<pallas_src>
import functools

import jax
import jax.numpy as jnp
from jax import lax
from jax.experimental import pallas as pl
from jax.experimental.pallas import tpu as pltpu

_HALO = 8  # sublane-aligned halo rows fetched on each side (>= width // 2)


# ----------------------------------------------------------------------------
# Pallas kernel: one (batch, seq_block) tile per grid step.
# ----------------------------------------------------------------------------
def _gated_conv_kernel(x_ref, lh_ref, rh_ref, w_ref, b_ref, o_ref, *,
                       seq_block, channels, width, pad, m_tile, im2col,
                       unroll):
    # x_ref:  (1, seq_block, C)  channels-last input tile (compute dtype)
    # lh_ref: (1, _HALO, C)      8 rows just before this tile (clamped at t=0)
    # rh_ref: (1, _HALO, C)      8 rows just after this tile (clamped at t=T-1)
    # w_ref:  (width*C, 2C)      weight-normed conv weight, im2col layout
    # b_ref:  (1, 2C)            conv bias (f32)
    # o_ref:  (1, seq_block, C)  gated output tile
    t = pl.program_id(1)
    is_first = t == 0
    is_last = t == pl.num_programs(1) - 1

    cdt = x_ref.dtype
    zero_halo = jnp.zeros((_HALO, channels), cdt)
    # Conv zero-padding at the ends of the full sequence.
    lh = jnp.where(is_first, zero_halo, lh_ref[0])
    rh = jnp.where(is_last, zero_halo, rh_ref[0])

    # Hoisted out of the loop: JAX does not CSE broadcast_in_dim.
    b_bcast = jnp.broadcast_to(b_ref[...].astype(jnp.float32),
                               (m_tile, 2 * channels))
    if im2col:
        w = w_ref[...]  # resident across all m-tiles of this seq block

    num_m = seq_block // m_tile

    def m_step(i, carry):
        m0 = pl.multiple_of(i * m_tile, m_tile)
        # Interior rows come straight from x_ref (aligned loads, no staging).
        mid = x_ref[0, pl.ds(m0, m_tile), :]
        lstart = pl.multiple_of(jnp.maximum(m0 - _HALO, 0), _HALO)
        left = x_ref[0, pl.ds(lstart, _HALO), :]
        left = jnp.where(m0 == 0, lh, left)
        rstart = pl.multiple_of(jnp.minimum(m0 + m_tile, seq_block - _HALO),
                                _HALO)
        right = x_ref[0, pl.ds(rstart, _HALO), :]
        right = jnp.where(m0 + m_tile == seq_block, rh, right)

        # (HALO + m_tile + HALO, C) value-level window; tap shifts are value
        # slices (XLU), never unaligned Ref slices.
        window = jnp.concatenate([left, mid, right], axis=0)

        if im2col:
            cols = [window[_HALO - pad + dk:_HALO - pad + dk + m_tile, :]
                    for dk in range(width)]
            patches = jnp.concatenate(cols, axis=1)        # (m_tile, width*C)
            acc = jnp.dot(patches, w,
                          preferred_element_type=jnp.float32) + b_bcast
        else:
            # v5e-friendly: width accumulating K=C matmuls, no patches concat.
            acc = b_bcast
            for dk in range(width):
                tap = window[_HALO - pad + dk:_HALO - pad + dk + m_tile, :]
                w_dk = w_ref[dk * channels:(dk + 1) * channels, :]
                acc = acc + jnp.dot(tap, w_dk,
                                    preferred_element_type=jnp.float32)

        out_half = acc[:, :channels]
        gate = acc[:, channels:]
        # sigmoid(x) == 0.5 * tanh(0.5 * x) + 0.5  -> tanh runs on the EUP slot.
        gated = out_half * (0.5 * jnp.tanh(0.5 * gate) + 0.5)
        o_ref[0, pl.ds(m0, m_tile), :] = gated.astype(o_ref.dtype)
        return carry

    lax.fori_loop(0, num_m, m_step, 0, unroll=unroll)


# ----------------------------------------------------------------------------
# Wrapper
# ----------------------------------------------------------------------------
def gated_conv(x, w_im2col, bias, *, width, seq_block=None, m_tile=None,
               compute_dtype=jnp.bfloat16, im2col=True, interpret=False):
    """x: (B, S, C) channels-last.  Returns (B, S, C) = out * sigmoid(gate)."""
    B, S, C = x.shape
    pad = width // 2
    assert width % 2 == 1 and 0 < pad <= _HALO
    assert w_im2col.shape == (width * C, 2 * C)
    assert bias.shape == (2 * C,)
    assert S % _HALO == 0, "sequence length must be a multiple of 8"

    if seq_block is None:
        seq_block = min(S, 512)
    assert S % seq_block == 0 and seq_block % _HALO == 0
    if m_tile is None:
        m_tile = min(seq_block, 128)
    if seq_block >= 128:
        m_tile = max(m_tile, 128)          # never starve the MXU rows
    assert seq_block % m_tile == 0 and m_tile % 8 == 0

    T = S // seq_block
    num_m = seq_block // m_tile
    sub_blocks = seq_block // _HALO        # halo-granularity blocks per tile
    n_sub = S // _HALO

    cdt = jnp.dtype(compute_dtype)
    x_c = x.astype(cdt)                    # halves HBM read traffic for bf16
    w_c = w_im2col.astype(cdt)
    b_c = bias.reshape(1, 2 * C).astype(jnp.float32)

    # VMEM budget from the actual (double-buffered) block sizes; clamp so the
    # tiling also fits v7x's 64 MiB/TC.  (Weight/bias have constant block
    # indices; their second buffer is the only avoidable slack.)
    csz = cdt.itemsize
    osz = jnp.dtype(x.dtype).itemsize
    block_bytes = (2 * seq_block * C * csz            # x tile
                   + 2 * 2 * _HALO * C * csz          # halo tiles
                   + 2 * width * C * 2 * C * csz      # weights
                   + 2 * 2 * C * 4                    # bias
                   + 2 * seq_block * C * osz)         # output tile
    vmem_limit = int(min(max(2 * block_bytes + (4 << 20), 16 << 20), 96 << 20))

    unroll = True if num_m <= 4 else 2

    kernel = functools.partial(
        _gated_conv_kernel, seq_block=seq_block, channels=C, width=width,
        pad=pad, m_tile=m_tile, im2col=im2col, unroll=unroll)

    return pl.pallas_call(
        kernel,
        out_shape=jax.ShapeDtypeStruct((B, S, C), x.dtype),
        grid=(B, T),
        in_specs=[
            # main seq tile
            pl.BlockSpec((1, seq_block, C), lambda b, t: (b, t, 0)),
            # 8-row left halo: rows [t*seq_block-8, t*seq_block), clamped at 0
            pl.BlockSpec((1, _HALO, C),
                         lambda b, t: (b, jnp.maximum(t * sub_blocks - 1, 0),
                                       0)),
            # 8-row right halo: rows [(t+1)*seq_block, +8), clamped at the end
            pl.BlockSpec((1, _HALO, C),
                         lambda b, t: (b, jnp.minimum((t + 1) * sub_blocks,
                                                      n_sub - 1), 0)),
            pl.BlockSpec((width * C, 2 * C), lambda b, t: (0, 0)),
            pl.BlockSpec((1, 2 * C), lambda b, t: (0, 0)),
        ],
        out_specs=pl.BlockSpec((1, seq_block, C), lambda b, t: (b, t, 0)),
        compiler_params=pltpu.CompilerParams(
            # both axes independent (no carried state) -> megacore sharding on
            # v7x even at batch 1-2.
            dimension_semantics=("parallel", "parallel"),
            vmem_limit_bytes=vmem_limit),
        interpret=interpret,
    )(x_c, x_c, x_c, w_c, b_c)


# ----------------------------------------------------------------------------
# Parameter prep: weight-norm reparameterization + im2col weight layout
# (one-time jnp glue; mirrors torch.nn.utils.weight_norm with dim=0).
# ----------------------------------------------------------------------------
def weight_norm_conv_weights(v, g):
    # v: (2C, C, width, 1), g: (2C,)
    norm = jnp.sqrt(jnp.sum(v * v, axis=(1, 2, 3), keepdims=True))
    w_eff = g.reshape(-1, 1, 1, 1) * v / norm              # (2C, C, width, 1)
    out_ch, in_ch, width, _ = v.shape
    # im2col layout: W[dk*C + c_in, c_out] = w_eff[c_out, c_in, dk, 0]
    w_im2col = jnp.transpose(w_eff[..., 0], (2, 1, 0)).reshape(width * in_ch,
                                                               out_ch)
    return w_eff, w_im2col


# ----------------------------------------------------------------------------
# Pure-JAX reference (mirrors torch Conv2d + split + gating), for correctness.
# ----------------------------------------------------------------------------
def reference_gated_conv(x_cl, w_eff, bias, *, width):
    B, S, C = x_cl.shape
    pad = width // 2
    xp = jnp.pad(x_cl, ((0, 0), (pad, pad), (0, 0)))
    acc = jnp.zeros((B, S, 2 * C), jnp.float32) + bias.astype(jnp.float32)
    for dk in range(width):
        acc = acc + jnp.einsum("bsc,oc->bso", xp[:, dk:dk + S, :],
                               w_eff[:, :, dk, 0])
    return acc[..., :C] * jax.nn.sigmoid(acc[..., C:])


if __name__ == "__main__":
    # Torch GatedConv input is (B, C, S, 1) NCHW; the kernel uses the
    # channels-last (B, S, C) layout (same math, C on the 128-lane axis).
    batch, seq, channels, width = 2, 512, 128, 3

    key = jax.random.PRNGKey(0)
    kx, kv, kg, kb = jax.random.split(key, 4)
    x = jax.random.normal(kx, (batch, seq, channels), jnp.float32)
    # WeightNormConv2d params: v (2C, C, width, 1), g (2C,), bias (2C,)
    v = 0.1 * jax.random.normal(kv, (2 * channels, channels, width, 1),
                                jnp.float32)
    g = 1.0 + 0.1 * jax.random.normal(kg, (2 * channels,), jnp.float32)
    bias = 0.1 * jax.random.normal(kb, (2 * channels,), jnp.float32)

    w_eff, w_im2col = weight_norm_conv_weights(v, g)
    ref = reference_gated_conv(x, w_eff, bias, width=width)

    # f32 compute, small seq blocks: exercises cross-tile halos (tight check).
    out_a = gated_conv(x, w_im2col, bias, width=width, seq_block=128,
                       compute_dtype=jnp.float32)
    out_a = jax.block_until_ready(out_a)
    assert out_a.shape == (batch, seq, channels)
    assert bool(jnp.all(jnp.isfinite(out_a)))
    assert jnp.allclose(out_a, ref, rtol=1e-3, atol=1e-3)

    # f32 compute, width-accumulating (non-im2col, v5e-style) path with
    # multiple m-tiles per seq block: exercises interior aligned over-reads.
    out_b = gated_conv(x, w_im2col, bias, width=width, seq_block=256,
                       m_tile=128, compute_dtype=jnp.float32, im2col=False)
    out_b = jax.block_until_ready(out_b)
    assert jnp.allclose(out_b, ref, rtol=1e-3, atol=1e-3)

    # Default path: bf16 MXU operands / f32 accumulation (loose tolerance).
    out_bf16 = gated_conv(x, w_im2col, bias, width=width)
    out_bf16 = jax.block_until_ready(out_bf16)
    assert jnp.allclose(out_bf16, ref, rtol=5e-2, atol=5e-2)

    print("KERNEL_OK")
</pallas_src>

<mosaic_0001>
module attributes {stable_mosaic.version = 11 : i64} {
  func.func @_gated_conv_kernel(%arg0: i32, %arg1: i32, %arg2: memref<1x128x128xf32, #tpu.memory_space<vmem>>, %arg3: memref<1x8x128xf32, #tpu.memory_space<vmem>>, %arg4: memref<1x8x128xf32, #tpu.memory_space<vmem>>, %arg5: memref<384x256xf32, #tpu.memory_space<vmem>>, %arg6: memref<1x256xf32, #tpu.memory_space<vmem>>, %arg7: memref<1x128x128xf32, #tpu.memory_space<vmem>>) attributes {dimension_semantics = [#tpu.dimension_semantics<parallel>, #tpu.dimension_semantics<parallel>], iteration_bounds = array<i64: 2, 4>, scalar_prefetch = 0 : i64, scratch_operands = 0 : i64, tpu.core_type = #tpu.core_type<tc>, window_params = [{transform_indices = @transform_0, window_bounds = array<i64: 1, 128, 128>}, {transform_indices = @transform_1, window_bounds = array<i64: 1, 8, 128>}, {transform_indices = @transform_2, window_bounds = array<i64: 1, 8, 128>}, {pipeline_mode = #tpu.pipeline_mode<synchronous>, transform_indices = @transform_3, window_bounds = array<i64: 384, 256>}, {pipeline_mode = #tpu.pipeline_mode<synchronous>, transform_indices = @transform_4, window_bounds = array<i64: 1, 256>}, {transform_indices = @transform_5, window_bounds = array<i64: 1, 128, 128>}]} {
    %c0_i32 = arith.constant 0 : i32
    %0 = arith.cmpi eq, %arg1, %c0_i32 : i32
    %c3_i32 = arith.constant 3 : i32
    %1 = arith.cmpi eq, %arg1, %c3_i32 : i32
    %cst = arith.constant 0.000000e+00 : f32
    %2 = vector.broadcast %cst : f32 to vector<8x128xf32>
    %c0 = arith.constant 0 : index
    %c0_0 = arith.constant 0 : index
    %c0_1 = arith.constant 0 : index
    %3 = vector.load %arg3[%c0, %c0_0, %c0_1] : memref<1x8x128xf32, #tpu.memory_space<vmem>>, vector<1x8x128xf32>
    %4 = vector.shape_cast %3 : vector<1x8x128xf32> to vector<8x128xf32>
    %5 = arith.select %0, %2, %4 : vector<8x128xf32>
    %c0_2 = arith.constant 0 : index
    %c0_3 = arith.constant 0 : index
    %c0_4 = arith.constant 0 : index
    %6 = vector.load %arg4[%c0_2, %c0_3, %c0_4] : memref<1x8x128xf32, #tpu.memory_space<vmem>>, vector<1x8x128xf32>
    %7 = vector.shape_cast %6 : vector<1x8x128xf32> to vector<8x128xf32>
    %8 = arith.select %1, %2, %7 : vector<8x128xf32>
    %c0_5 = arith.constant 0 : index
    %c0_6 = arith.constant 0 : index
    %9 = vector.load %arg6[%c0_5, %c0_6] : memref<1x256xf32, #tpu.memory_space<vmem>>, vector<1x256xf32>
    %10 = vector.shape_cast %9 : vector<1x256xf32> to vector<1x256xf32>
    %11 = vector.broadcast %10 : vector<1x256xf32> to vector<128x256xf32>
    %c0_7 = arith.constant 0 : index
    %c0_8 = arith.constant 0 : index
    %12 = vector.load %arg5[%c0_7, %c0_8] : memref<384x256xf32, #tpu.memory_space<vmem>>, vector<384x256xf32>
    %c0_i32_9 = arith.constant 0 : i32
    %c128_i32 = arith.constant 128 : i32
    %13 = arith.muli %c0_i32_9, %c128_i32 : i32
    %14 = tpu.assume_multiple %13, 128 : i32
    %c0_10 = arith.constant 0 : index
    %15 = arith.index_cast %14 : i32 to index
    %c0_11 = arith.constant 0 : index
    %16 = vector.load %arg2[%c0_10, %15, %c0_11] : memref<1x128x128xf32, #tpu.memory_space<vmem>>, vector<1x128x128xf32>
    %17 = vector.shape_cast %16 : vector<1x128x128xf32> to vector<128x128xf32>
    %c8_i32 = arith.constant 8 : i32
    %18 = arith.subi %14, %c8_i32 : i32
    %c0_i32_12 = arith.constant 0 : i32
    %19 = arith.maxsi %18, %c0_i32_12 : i32
    %20 = tpu.assume_multiple %19, 8 : i32
    %c0_13 = arith.constant 0 : index
    %21 = arith.index_cast %20 : i32 to index
    %c0_14 = arith.constant 0 : index
    %22 = vector.load %arg2[%c0_13, %21, %c0_14] : memref<1x128x128xf32, #tpu.memory_space<vmem>>, vector<1x8x128xf32>
    %23 = vector.shape_cast %22 : vector<1x8x128xf32> to vector<8x128xf32>
    %c0_i32_15 = arith.constant 0 : i32
    %24 = arith.cmpi eq, %14, %c0_i32_15 : i32
    %25 = arith.select %24, %5, %23 : vector<8x128xf32>
    %c128_i32_16 = arith.constant 128 : i32
    %26 = arith.addi %14, %c128_i32_16 : i32
    %c120_i32 = arith.constant 120 : i32
    %27 = arith.minsi %26, %c120_i32 : i32
    %28 = tpu.assume_multiple %27, 8 : i32
    %c0_17 = arith.constant 0 : index
    %29 = arith.index_cast %28 : i32 to index
    %c0_18 = arith.constant 0 : index
    %30 = vector.load %arg2[%c0_17, %29, %c0_18] : memref<1x128x128xf32, #tpu.memory_space<vmem>>, vector<1x8x128xf32>
    %31 = vector.shape_cast %30 : vector<1x8x128xf32> to vector<8x128xf32>
    %c128_i32_19 = arith.constant 128 : i32
    %32 = arith.addi %14, %c128_i32_19 : i32
    %c128_i32_20 = arith.constant 128 : i32
    %33 = arith.cmpi eq, %32, %c128_i32_20 : i32
    %34 = arith.select %33, %8, %31 : vector<8x128xf32>
    %35 = tpu.concatenate %25, %17, %34 in 0 : vector<8x128xf32>, vector<128x128xf32>, vector<8x128xf32> -> vector<144x128xf32>
    %36 = vector.extract_strided_slice %35 {offsets = [7, 0], sizes = [128, 128], strides = [1, 1]} : vector<144x128xf32> to vector<128x128xf32>
    %37 = vector.extract_strided_slice %35 {offsets = [8, 0], sizes = [128, 128], strides = [1, 1]} : vector<144x128xf32> to vector<128x128xf32>
    %38 = vector.extract_strided_slice %35 {offsets = [9, 0], sizes = [128, 128], strides = [1, 1]} : vector<144x128xf32> to vector<128x128xf32>
    %39 = tpu.concatenate %36, %37, %38 in 1 : vector<128x128xf32>, vector<128x128xf32>, vector<128x128xf32> -> vector<128x384xf32>
    %cst_21 = arith.constant dense<0.000000e+00> : vector<128x256xf32>
    %40 = tpu.matmul %39, %12, %cst_21 {dimension_numbers = #tpu.dot_dimension_numbers<[1], [0], [0], [1], [0, 0, 1, 1], [], []>} : vector<128x384xf32>, vector<384x256xf32>, vector<128x256xf32> -> vector<128x256xf32>
    %41 = arith.addf %40, %11 : vector<128x256xf32>
    %42 = vector.extract_strided_slice %41 {offsets = [0, 0], sizes = [128, 128], strides = [1, 1]} : vector<128x256xf32> to vector<128x128xf32>
    %43 = vector.extract_strided_slice %41 {offsets = [0, 128], sizes = [128, 128], strides = [1, 1]} : vector<128x256xf32> to vector<128x128xf32>
    %cst_22 = arith.constant 5.000000e-01 : f32
    %44 = vector.broadcast %cst_22 : f32 to vector<128x128xf32>
    %45 = arith.mulf %44, %43 : vector<128x128xf32>
    %46 = math.tanh %45 : vector<128x128xf32>
    %cst_23 = arith.constant 5.000000e-01 : f32
    %47 = vector.broadcast %cst_23 : f32 to vector<128x128xf32>
    %48 = arith.mulf %47, %46 : vector<128x128xf32>
    %cst_24 = arith.constant 5.000000e-01 : f32
    %49 = vector.broadcast %cst_24 : f32 to vector<128x128xf32>
    %50 = arith.addf %48, %49 : vector<128x128xf32>
    %51 = arith.mulf %42, %50 : vector<128x128xf32>
    %c0_25 = arith.constant 0 : index
    %52 = arith.index_cast %14 : i32 to index
    %c0_26 = arith.constant 0 : index
    %53 = vector.load %arg7[%c0_25, %52, %c0_26] : memref<1x128x128xf32, #tpu.memory_space<vmem>>, vector<1x128x128xf32>
    %54 = vector.shape_cast %53 : vector<1x128x128xf32> to vector<128x128xf32>
    %55 = vector.shape_cast %51 : vector<128x128xf32> to vector<1x128x128xf32>
    tpu.vector_store %arg7[%c0_25, %52, %c0_26], %55 {strides = array<i32>} : memref<1x128x128xf32, #tpu.memory_space<vmem>>, vector<1x128x128xf32>,
    %c1_i32 = arith.constant 1 : i32
    return
  }
  func.func @transform_0(%arg0: i32, %arg1: i32) -> (i32, i32, i32) {
    %c0_i32 = arith.constant 0 : i32
    %c0_i32_0 = arith.constant 0 : i32
    return %arg0, %arg1, %c0_i32 : i32, i32, i32
  }
  func.func @transform_1(%arg0: i32, %arg1: i32) -> (i32, i32, i32) {
    %c16_i32 = arith.constant 16 : i32
    %0 = arith.muli %arg1, %c16_i32 : i32
    %c1_i32 = arith.constant 1 : i32
    %1 = arith.subi %0, %c1_i32 : i32
    %c0_i32 = arith.constant 0 : i32
    %2 = arith.maxsi %1, %c0_i32 : i32
    %c0_i32_0 = arith.constant 0 : i32
    %c0_i32_1 = arith.constant 0 : i32
    return %arg0, %2, %c0_i32_0 : i32, i32, i32
  }
  func.func @transform_2(%arg0: i32, %arg1: i32) -> (i32, i32, i32) {
    %c1_i32 = arith.constant 1 : i32
    %0 = arith.addi %arg1, %c1_i32 : i32
    %c16_i32 = arith.constant 16 : i32
    %1 = arith.muli %0, %c16_i32 : i32
    %c63_i32 = arith.constant 63 : i32
    %2 = arith.minsi %1, %c63_i32 : i32
    %c0_i32 = arith.constant 0 : i32
    %c0_i32_0 = arith.constant 0 : i32
    return %arg0, %2, %c0_i32 : i32, i32, i32
  }
  func.func @transform_3(%arg0: i32, %arg1: i32) -> (i32, i32) {
    %c0_i32 = arith.constant 0 : i32
    %c0_i32_0 = arith.constant 0 : i32
    %c0_i32_1 = arith.constant 0 : i32
    return %c0_i32, %c0_i32_0 : i32, i32
  }
  func.func @transform_4(%arg0: i32, %arg1: i32) -> (i32, i32) {
    %c0_i32 = arith.constant 0 : i32
    %c0_i32_0 = arith.constant 0 : i32
    %c0_i32_1 = arith.constant 0 : i32
    return %c0_i32, %c0_i32_0 : i32, i32
  }
  func.func @transform_5(%arg0: i32, %arg1: i32) -> (i32, i32, i32) {
    %c0_i32 = arith.constant 0 : i32
    %c0_i32_0 = arith.constant 0 : i32
    return %arg0, %arg1, %c0_i32 : i32, i32, i32
  }
}

</mosaic_0001>

<bundles_post_ra>
// kernel: tpu_custom_call.1
= control target key start
LH: loop header
LB: loop body
LE: loop exit
PB: predicated region body
PF: predicated region fallthrough
CT: control target
= control target key end

     0   :  { %s2962_s0 = inlined_call_operand.hbm [shape: f32[2,512,128], index: 0, kind: input, shape index: {}]   ;;  %s2963_s1 = inlined_call_operand.hbm [shape: f32[2,512,128], index: 1, kind: input, shape index: {}]   ;;  %s2964_s2 = inlined_call_operand.hbm [shape: f32[2,512,128], index: 2, kind: input, shape index: {}]   ;;  %s2965_s3 = inlined_call_operand.hbm [shape: f32[384,256], index: 3, kind: input, shape index: {}]   ;;  %s2966_s4 = inlined_call_operand.vmem [shape: f32[1,256], index: 4, kind: input, shape index: {}]   ;;  %s2967_s5 = inlined_call_operand.hbm [shape: f32[2,512,128], index: 5, kind: output, shape index: {}]  }
   0x1   :  { %2984 = sst [smem:[#allocation26_spill]] %s2962_s0 }
   0x2   :  { %2985 = sst [smem:[#allocation27_spill]] %s2963_s1 }
   0x3   :  { %2986 = sst [smem:[#allocation28_spill]] %s2964_s2 }
   0x4   :  { %2987 = sst [smem:[#allocation29_spill]] %s2965_s3 }
   0x5   :  { %2988 = sst [smem:[#allocation30_spill]] %s2966_s4 }
   0x6   :  { %2989 = sst [smem:[#allocation31_spill]] %s2967_s5 }
   0x7   :  { %10 = vsyncpa [#allocation3], 0 }
   0x8   :  { %12 = vsyncpa [#allocation3 + $0x1], 0 }
   0x9   :  { %13 = vsyncpa [#allocation6], 0 }
   0xa   :  { %15 = vsyncpa [#allocation6 + $0x1], 0 }
   0xb   :  { %16 = vsyncpa [#allocation9], 0 }
   0xc   :  { %17 = vsyncpa [#allocation4], 0 }
   0xd   :  { %19 = vsyncpa [#allocation4 + $0x1], 0  ;;  %s2075_s18 = smov 0   ;;  %s2077_s19 = smov 0  }
   0xe   :  { %s2079_s20 = smov 0   ;;  %s2081_s21 = smov 0  }
   0xf   :  { %s2083_s22 = smov 0   ;;  %s2085_s23 = smov 0  }
  0x10   :  { %s2087_s24 = smov 0   ;;  %s2089_s25 = smov 0  }
  0x11   :  { %s2091_s26 = smov 0   ;;  %s2093_s27 = smov 0  }
  0x12   :  { %s2095_s28 = smov 0   ;;  %s2097_s29 = smov 0  }
  0x13   :  { %s2099_s30 = smov 0   ;;  %s2101_s6 = smov 0  }
  0x14 LB: > { %2990 = sst [smem:[#allocation16_spill]] %s1995_s22  ;;  %s2146_s7 = sadd.s32 4294967295, %s2031_s6   ;;  %s2031_s6 = sphi %s2101_s6, %s25_s6   ;;  %s2027_s30 = sphi %s2099_s30, %s3045_s30   ;;  %s2023_s29 = sphi %s2097_s29, %s3044_s29   ;;  %s2019_s28 = sphi %s2095_s28, %s3043_s28   ;;  %s2015_s27 = sphi %s2093_s27, %s3042_s27   ;;  %s2011_s26 = sphi %s2091_s26, %s3054_s26   ;;  %s2007_s25 = sphi %s2089_s25, %s3053_s25   ;;  %s2003_s24 = sphi %s2087_s24, %s3052_s24   ;;  %s1999_s23 = sphi %s2085_s23, %s3051_s23   ;;  %s1995_s22 = sphi %s2083_s22, %s3050_s22   ;;  %s1991_s21 = sphi %s2081_s21, %s3039_s21   ;;  %s1987_s20 = sphi %s2079_s20, %s3049_s20   ;;  %s1983_s19 = sphi %s2077_s19, %s3048_s19   ;;  %s1979_s18 = sphi %s2075_s18, %s3047_s18  }
  0x15   : > { %2991 = sst [smem:[#allocation17_spill]] %s2015_s27  ;;  %s34_s8 = sadd.s32 1, %s2023_s29 }
  0x16   : > { %2992 = sst [smem:[#allocation18_spill]] %s2019_s28  ;;  %p35_p0 = scmp.ge.s32.totalorder %s34_s8, 4 }
  0x17   : > { %2993 = sst [smem:[#allocation19_spill]] %s2023_s29  ;;  %s37_s9 = sadd.s32 1, %s2027_s30 }
  0x18   : > { %2994 = sst [smem:[#allocation20_spill]] %s2027_s30  ;;  %p2978_p1 = scmp.eq.s32.totalorder %s2031_s6, 0 }
  0x19   : > { %p2979_p2 = scmp.eq.s32.totalorder %s2146_s7, 0  ;;  %s3056_s8 = smov (%p35_p0, %s34_s8), 0 }
  0x1a   : > { %2995 = sst [smem:[#allocation21_spill]] %s3056_s8  ;;  %s3058_s9 = smov (!%p35_p0, %s37_s9), %s2027_s30 }
  0x1b   : > { %s42_s10 = ssub.s32 %s2023_s29, %s3056_s8  ;;  %s2158_s11 = sshll.u32 %s2023_s29, 4 }
  0x1c   : > { %p39_p3 = scmp.ge.s32.totalorder %s3058_s9, 2  ;;  %s1363_s12 = sadd.s32 4294967295, %s2158_s11 }
  0x1d   : > { %p71_p4 = scmp.gt.s32.totalorder %s1363_s12, 0  ;;  %s1364_s13 = sshll.u32 %s3056_s8, 4 }
  0x1e   : > { %s3060_s9 = smov (%p39_p3, %s3058_s9), 0  ;;  %s1365_s15 = sadd.s32 4294967295, %s1364_s13 }
  0x1f   : > { %2996 = sst [smem:[#allocation22_spill]] %s3060_s9  ;;  %s3062_s12 = smov (!%p71_p4, %s1363_s12), 0 }
  0x20   : > { %s2166_s14 = ssub.s32 %s2027_s30, %s3060_s9  ;;  %p75_p5 = scmp.gt.s32.totalorder %s1365_s15, 0 }
  0x21   : > { %2997 = sst [smem:[#allocation23_spill]] %s2166_s14  ;;  %s2169_s16 = sor.u32 %s42_s10, %s2166_s14 }
  0x22   : > { %s82_s17 = sadd.s32 1, %s1999_s23  ;;  %s3064_s15 = smov (!%p75_p5, %s1365_s15), 0 }
  0x23   : > { %p89_p7 = scmp.ne.s32.totalorder %s1999_s23, %s1995_s22  ;;  %p95_p8 = scmp.ne.s32.totalorder %s1995_s22, %s1991_s21 }
  0x24   : > { %s78_s9 = ssub.s32 %s3062_s12, %s3064_s15  ;;  %s2177_s8 = sadd.s32 16, %s1364_s13 }
  0x25   : > { %s79_s29 = sor.u32 %s78_s9, %s2166_s14  ;;  %p2182_p9 = por %p89_p7, %p2978_p1 }
  0x26   : > { %p80_p10 = scmp.eq.s32.totalorder %s79_s29, 0  ;;  %p2188_p11 = por %p95_p8, %p2979_p2 }
  0x27   : > { %p2977_p13 = scmp.lt.s32.totalorder %s2031_s6, 8  ;;  %s2198_s13 = sshll.u32 %s2027_s30, 6 }
  0x28   : > { %s2999_s5 = scalar_select %p2188_p11, 1, 0 }
  0x29   : > { %s2194_s21 = scalar_select %p80_p10, %s1999_s23, %s82_s17  }
  0x2a   : > { %s264_s9 = sand.u32 1, %s2031_s6   ;;  %s251_s15 = sadd.s32 %s2198_s13, %s2158_s11 }
  0x2b   : > { %3000 = sst [smem:[#allocation24_spill]] %s2194_s21  ;;  %s266_s28 = sand.u32 1, %s1999_s23  }
  0x2c   : > { %s277_s4 = sadd.s32 %s2198_s13, %s3062_s12  ;;  %s1375_s27 = sshll.u32 %s266_s28, 3 }
  0x2d   : > { %s1379_s22 = sshll.u32 %s277_s4, 7  ;;  %s3001_s1 = sld [smem:[#allocation27_spill]] }
  0x2e   : > { %s268_s17 = scalar_lea.vmem [#allocation5], %s1375_s27  ;;  %p2214_p0 = pnand %p2977_p13, %p2182_p9 }
  0x2f   : > { %s281_s30 = sshll.u32 %s268_s17, 4  ;;  %s2220_s4 = scalar_lea.sflag [#allocation6], %s264_s9  ;;  %s2218_s30 = int_to_ptr.vmem [resolvable:$true] %s281_s30 }
  0x30   : > { %p1757_p4 = pneg %p2214_p0 }
  0x33   : > { %s2208_s14 = scalar_lea.hbm %s3001_s1, %s1379_s22  ;;  %s1760_s28 = scalar_lea.hbm %s3001_s1, 16384 }
  0x34   : > { %s1755_s2 = scalar_lea.hbm %s2208_s14, 128  ;;  %p1761_p8 = scmp.lt.u32.totalorder %s2208_s14, %s3001_s1 }
  0x35   : > { %p1756_p3 = scmp.ne.s32.totalorder %s2208_s14, %s1755_s2  ;;  %p1762_p9 = scmp.lt.u32.totalorder %s1760_s28, %s1755_s2 }
  0x36   : > { %p1764_p12 = scmp.lt.u32.totalorder %s1755_s2, %s2208_s14 }
  0x37   : > { %p1758_p5 = pnand %p1757_p4, %p1756_p3  ;;  %p1763_p10 = por %p1762_p9, %p1761_p8 }
  0x39   : > { %p1759_p7 = pneg %p1758_p5  ;;  %p1765_p13 = por %p1764_p12, %p1763_p10 }
  0x3b   : > { %p1766_p1 = pnand %p1765_p13, %p1759_p7 }
  0x3d   : > { %1769 = shalt.err (!%p1766_p1)
}
  0x3e   : > { %s1770_s9 = scalar_lea.vmem %s2218_s30, 128  ;;  %s2033_s29 = smov [#allocation5]  }
  0x3f   : > { %p1771_p3 = scmp.ne.s32.totalorder %s2218_s30, %s1770_s9  ;;  %s1775_s17 = sshll.u32 %s2033_s29, 4  ;;  %s1776_s17 = int_to_ptr.vmem [resolvable:$false] %s1775_s17 }
  0x40   : > { %s1777_s22 = scalar_lea.vmem %s1776_s17, 256  ;;  %p1778_p2 = scmp.lt.s32.totalorder %s2218_s30, %s1776_s17 }
  0x41   : > { %p1773_p5 = pnand %p1771_p3, %p1757_p4  ;;  %p1779_p8 = scmp.lt.s32.totalorder %s1777_s22, %s1770_s9 }
  0x43   : > { %p1774_p6 = pneg %p1773_p5  ;;  %p1780_p9 = por %p1779_p8, %p1778_p2 }
  0x45   : > { %p1781_p12 = pnand %p1780_p9, %p1774_p6 }
  0x47   : > { %1784 = shalt.err (!%p1781_p12)
}
  0x48   : > { %1585 = dma.hbm_to_vmem [thread:$0]  (!%p2214_p0), %s2208_s14, 128, %s2218_s30, %s2220_s4  }
  0x49   : > { %p1368_p1 = scmp.ge.s32.totalorder %s2031_s6, 1  ;;  %p212_p13 = scmp.lt.s32.totalorder %s2031_s6, 9 }
  0x4a   : > { %s2034_s27 = smov [#allocation8]   ;;  %p3004_p6 = scmp.eq.s32.totalorder %s2146_s7, 0 }
  0x4b   : > { %p2250_p4 = pnand %p1368_p1, %p212_p13  ;;  %s224_s28 = sshll.u32 %s2034_s27, 4  ;;  %s225_s28 = int_to_ptr.vmem [resolvable:$true] %s224_s28 }
  0x4c   : > { %s1361_s12 = sadd.s32 4294967294, %s2031_s6   ;;  %s3006_s3 = sld [smem:[#allocation29_spill]] }
  0x4d   : > { %s3003_s2 = scalar_select %p2250_p4, 1, 0 }
  0x4e   : > { %p1575_p2 = pneg %p2250_p4 }
  0x50   : > { %p2258_p7 = pnand %p1575_p2, %p3004_p6 }
  0x52   : > { %s1785_s10 = scalar_lea.hbm %s3006_s3, 12288  ;;  %p1787_p10 = pneg %p2258_p7 }
  0x53   : > { %p1786_p0 = scmp.ne.s32.totalorder %s3006_s3, %s1785_s10  ;;  %p1792_p8 = scmp.lt.u32.totalorder %s1785_s10, %s3006_s3 }
  0x55   : > { %p1788_p3 = pnand %p1787_p10, %p1786_p0 }
  0x57   : > { %p1789_p5 = pneg %p1788_p3 }
  0x59   : > { %p1794_p9 = pnand %p1792_p8, %p1789_p5 }
  0x5b   : > { %1797 = shalt.err (!%p1794_p9)
}
  0x5c   : > { %s1798_s27 = scalar_lea.vmem %s225_s28, 12288  ;;  %p1806_p2 = scmp.lt.s32.totalorder %s225_s28, %s225_s28 }
  0x5d   : > { %p1799_p12 = scmp.ne.s32.totalorder %s225_s28, %s1798_s27  ;;  %p1807_p6 = scmp.lt.s32.totalorder %s1798_s27, %s1798_s27 }
  0x5f   : > { %p1801_p1 = pnand %p1799_p12, %p1787_p10  ;;  %p1808_p11 = por %p1807_p6, %p1806_p2 }
  0x61   : > { %p1802_p13 = pneg %p1801_p1 }
  0x63   : > { %p1809_p4 = pnand %p1808_p11, %p1802_p13 }
  0x65   : > { %1812 = shalt.err (!%p1809_p4)
}
  0x66   : > { %s2035_s30 = smov 256   ;;  %s2036_s14 = smov 16  }
  0x67   : > { %1578 = dma.hbm_to_vmem [thread:$0]  (!%p2258_p7), %s3006_s3, 12288, %s225_s28, [#allocation9], %s2035_s30, %s2035_s30, %s2036_s14  }
  0x68   : > { %s46_s29 = sadd.s32 1, %s2011_s26  ;;  %p53_p11 = scmp.ne.s32.totalorder %s2011_s26, %s2007_s25 }
  0x69   : > { %p3007_p4 = scmp.eq.s32.totalorder %s2169_s16, 0  ;;  %p3009_p0 = scmp.eq.s32.totalorder %s2031_s6, 0 }
  0x6a   : > { %p59_p3 = scmp.ne.s32.totalorder %s2007_s25, %s2003_s24  ;;  %p199_p5 = scmp.eq.s32.totalorder %s2146_s7, 7 }
  0x6b   : > { %s2285_s17 = scalar_select %p3007_p4, %s2011_s26, %s46_s29  }
  0x6c   : > { %p2289_p10 = por %p3009_p0, %p53_p11  ;;  %p205_p8 = scmp.eq.s32.totalorder %s1361_s12, 7 }
  0x6d   : > { %3008 = sst [smem:[#allocation25_spill]] %s2285_s17  ;;  %p3011_p9 = scmp.eq.s32.totalorder %s2146_s7, 0 }
  0x6e   : > { %s241_s28 = sand.u32 1, %s2011_s26   ;;  %p2303_p7 = por %p199_p5, %p53_p11 }
  0x6f   : > { %p2298_p12 = por %p3011_p9, %p59_p3  ;;  %p2307_p1 = por %p205_p8, %p59_p3 }
  0x70   : > { %s3013_s16 = scalar_select %p2303_p7, 1, 0 }
  0x71   : > { %s3014_s27 = scalar_select %p2307_p1, 1, 0 }
  0x72   : > { %s1371_s30 = sshll.u32 %s241_s28, 7  ;;  %s1374_s14 = sshll.u32 %s251_s15, 7 }
  0x73   : > { %s3015_s0 = sld [smem:[#allocation26_spill]]  ;;  %s245_s29 = scalar_lea.vmem [#allocation2], %s1371_s30 }
  0x74   : > { %s254_s1 = sshll.u32 %s245_s29, 4  ;;  %p3016_p13 = scmp.lt.s32.totalorder %s2031_s6, 8  ;;  %s2319_s1 = int_to_ptr.vmem [resolvable:$true] %s254_s1 }
  0x75   : > { %s2329_s15 = scalar_lea.sflag [#allocation3], %s241_s28 }
  0x76   : > { %p2325_p2 = pnand %p3016_p13, %p2289_p10 }
  0x78   : > { %p1815_p11 = pneg %p2325_p2 }
  0x79   : > { %s2317_s12 = scalar_lea.hbm %s3015_s0, %s1374_s14  ;;  %s1818_s22 = scalar_lea.hbm %s3015_s0, 16384 }
  0x7a   : > { %s1813_s14 = scalar_lea.hbm %s2317_s12, 2048  ;;  %p1819_p10 = scmp.lt.u32.totalorder %s2317_s12, %s3015_s0 }
  0x7b   : > { %p1814_p6 = scmp.ne.s32.totalorder %s2317_s12, %s1813_s14  ;;  %p1820_p3 = scmp.lt.u32.totalorder %s1818_s22, %s1813_s14 }
  0x7c   : > { %p1822_p8 = scmp.lt.u32.totalorder %s1813_s14, %s2317_s12 }
  0x7d   : > { %p1816_p4 = pnand %p1815_p11, %p1814_p6  ;;  %p1821_p5 = por %p1820_p3, %p1819_p10 }
  0x7f   : > { %p1817_p0 = pneg %p1816_p4  ;;  %p1823_p9 = por %p1822_p8, %p1821_p5 }
  0x81   : > { %p1824_p13 = pnand %p1823_p9, %p1817_p0 }
  0x83   : > { %1827 = shalt.err (!%p1824_p13)
}
  0x84   : > { %s1828_s28 = scalar_lea.vmem %s2319_s1, 2048  ;;  %s2037_s30 = smov [#allocation2]  }
  0x85   : > { %p1829_p6 = scmp.ne.s32.totalorder %s2319_s1, %s1828_s28  ;;  %s1833_s10 = sshll.u32 %s2037_s30, 4  ;;  %s1834_s10 = int_to_ptr.vmem [resolvable:$false] %s1833_s10 }
  0x86   : > { %s1835_s9 = scalar_lea.vmem %s1834_s10, 4096  ;;  %p1836_p7 = scmp.lt.s32.totalorder %s2319_s1, %s1834_s10 }
  0x87   : > { %p1831_p4 = pnand %p1829_p6, %p1815_p11  ;;  %p1837_p10 = scmp.lt.s32.totalorder %s1835_s9, %s1828_s28 }
  0x89   : > { %p1832_p1 = pneg %p1831_p4  ;;  %p1838_p3 = por %p1837_p10, %p1836_p7 }
  0x8b   : > { %p1839_p5 = pnand %p1838_p3, %p1832_p1 }
  0x8d   : > { %1842 = shalt.err (!%p1839_p5)
}
  0x8e   : > { %s2038_s14 = smov 128   ;;  %s3018_s22 = sld [smem:[#allocation23_spill]] }
  0x8f   : > { %s2039_s29 = smov 8   ;;  %s1398_s28 = sadd.s32 16, %s2158_s11 }
  0x90   : > { %1582 = dma.hbm_to_vmem [thread:$0]  (!%p2325_p2), %s2317_s12, 2048, %s2319_s1, %s2329_s15, %s2038_s14, %s2038_s14, %s2039_s29  }
  0x91   : > { %p107_p7 = scmp.lt.s32.totalorder %s1398_s28, 63  ;;  %s118_s30 = sadd.s32 1, %s1987_s20 }
  0x92   : > { %p3019_p1 = scmp.lt.s32.totalorder %s2177_s8, 63  ;;  %p125_p11 = scmp.ne.s32.totalorder %s1987_s20, %s1983_s19 }
  0x93   : > { %s3068_s28 = smov (!%p107_p7, %s1398_s28), 63  ;;  %p131_p0 = scmp.ne.s32.totalorder %s1983_s19, %s1979_s18 }
  0x94   : > { %s3066_s8 = smov (!%p3019_p1, %s2177_s8), 63  ;;  %s290_s9 = sand.u32 1, %s1987_s20  }
  0x95   : > { %s114_s10 = ssub.s32 %s3068_s28, %s3066_s8  ;;  %p3020_p8 = scmp.eq.s32.totalorder %s2031_s6, 0 }
  0x96   : > { %s115_s0 = sor.u32 %s114_s10, %s3018_s22  ;;  %p3021_p6 = scmp.eq.s32.totalorder %s2146_s7, 0 }
  0x97   : > { %p127_p9 = por %p125_p11, %p3020_p8  ;;  %p116_p13 = scmp.eq.s32.totalorder %s115_s0, 0 }
  0x98   : > { %p2372_p4 = por %p131_p0, %p3021_p6  ;;  %s1380_s1 = sshll.u32 %s290_s9, 3 }
  0x99   : > { %s301_s11 = sadd.s32 %s2198_s13, %s3068_s28  ;;  %s3023_s17 = sld [smem:[#allocation28_spill]] }
  0x9a   : > { %s3022_s3 = scalar_select %p2372_p4, 1, 0 }
  0x9b   : > { %s2378_s12 = scalar_select %p116_p13, %s1987_s20, %s118_s30  }
  0x9c   : > { %s1383_s15 = sshll.u32 %s301_s11, 7  ;;  %s292_s0 = scalar_lea.vmem [#allocation7], %s1380_s1 }
  0x9d   : > { %s305_s8 = sshll.u32 %s292_s0, 4  ;;  %p3024_p2 = scmp.lt.s32.totalorder %s2031_s6, 8  ;;  %s2385_s8 = int_to_ptr.vmem [resolvable:$true] %s305_s8 }
  0x9f   : > { %s2383_s18 = scalar_lea.hbm %s3023_s17, %s1383_s15  ;;  %p2389_p10 = pnand %p3024_p2, %p127_p9 }
  0xa0   : > { %s1843_s13 = scalar_lea.hbm %s2383_s18, 128  ;;  %s1848_s10 = scalar_lea.hbm %s3023_s17, 16384 }
  0xa1   : > { %p1844_p3 = scmp.ne.s32.totalorder %s2383_s18, %s1843_s13  ;;  %p1845_p5 = pneg %p2389_p10 }
  0xa2   : > { %p1849_p11 = scmp.lt.u32.totalorder %s2383_s18, %s3023_s17  ;;  %p1850_p0 = scmp.lt.u32.totalorder %s1848_s10, %s1843_s13 }
  0xa3   : > { %p1846_p7 = pnand %p1845_p5, %p1844_p3  ;;  %p1852_p9 = scmp.lt.u32.totalorder %s1843_s13, %s2383_s18 }
  0xa4   : > { %p1851_p8 = por %p1850_p0, %p1849_p11 }
  0xa5   : > { %p1847_p1 = pneg %p1846_p7 }
  0xa6   : > { %p1853_p13 = por %p1852_p9, %p1851_p8 }
  0xa8   : > { %p1854_p6 = pnand %p1853_p13, %p1847_p1 }
  0xaa   : > { %1857 = shalt.err (!%p1854_p6)
}
  0xab   : > { %s1858_s11 = scalar_lea.vmem %s2385_s8, 128  ;;  %s2040_s15 = smov [#allocation7]  }
  0xac   : > { %p1859_p2 = scmp.ne.s32.totalorder %s2385_s8, %s1858_s11  ;;  %s1863_s14 = sshll.u32 %s2040_s15, 4  ;;  %s1864_s14 = int_to_ptr.vmem [resolvable:$false] %s1863_s14 }
  0xad   : > { %s1865_s29 = scalar_lea.vmem %s1864_s14, 256  ;;  %p1866_p4 = scmp.lt.s32.totalorder %s2385_s8, %s1864_s14 }
  0xae   : > { %p1861_p3 = pnand %p1859_p2, %p1845_p5  ;;  %p1867_p11 = scmp.lt.s32.totalorder %s1865_s29, %s1858_s11 }
  0xb0   : > { %p1862_p7 = pneg %p1861_p3  ;;  %p1868_p0 = por %p1867_p11, %p1866_p4 }
  0xb2   : > { %p1869_p8 = pnand %p1868_p0, %p1862_p7 }
  0xb4   : > { %1872 = shalt.err (!%p1869_p8)
}
  0xb5   : > { %1588 = dma.hbm_to_vmem [thread:$0]  (!%p2389_p10), %s2383_s18, 128, %s2385_s8, %s2220_s4  }
  0xb6   : > { %p3026_p1 = scmp.ne.s32.totalorder %s3003_s2, 0 }
  0xb7   : > { %s2422_s0 = sand.u32 (!%p3026_p1), 1, %s2007_s25  }
  0xb8   : > { %314 = sbr.rel (%p3026_p1) target bundleno = 587 (0x24b), region = 40  ;;  %s1385_s13 = sshll.u32 (!%p3026_p1), %s2422_s0, 7 }
  0xb9   : > { %s317_s28 = scalar_lea.sflag (!%p3026_p1), [#allocation3], %s2422_s0  ;;  %s2428_s30 = scalar_lea.vmem (!%p3026_p1), [#allocation2], %s1385_s13 }
  0xbf   : > { %1958 = dma.done.wait (%p2298_p12), %s317_s28, 2048  }
  0xc0   : > { %1960 = vsyncadd (%p2298_p12), %s317_s28, 4294965248  ;;  %s3027_s4 = sld [smem:[#allocation16_spill]]  ;;  %s325_s2 = sand.u32 1, %s2146_s7  }
  0xc1   : > { %s326_s22 = scalar_lea.sflag [#allocation6], %s325_s2  ;;  %p3028_p4 = scmp.ne.s32.totalorder %s2999_s5, 0 }
  0xc6   : > { %s327_s18 = sand.u32 1, %s3027_s4  }
  0xc7   : > { %s2436_s8 = sshll.u32 %s327_s18, 3 }
  0xc8   : > { %s329_s10 = scalar_lea.vmem [#allocation5], %s2436_s8 }
  0xc9   : > { %1962 = dma.done.wait (%p3028_p4), %s326_s22, 128  }
  0xca   : > { %1964 = vsyncadd (%p3028_p4), %s326_s22, 4294967168  ;;  %s336_s9 = sand.u32 1, %s1983_s19   ;;  %p3029_p12 = scmp.ne.s32.totalorder %s3022_s3, 0 }
  0xcb   : > { %s2444_s21 = sshll.u32 %s336_s9, 3 }
  0xcc   : > { %s338_s1 = scalar_lea.vmem [#allocation7], %s2444_s21 }
  0xcd   : > { %1966 = dma.done.wait (%p3029_p12), %s326_s22, 128  }
  0xce   : > { %1968 = vsyncadd (%p3029_p12), %s326_s22, 4294967168  ;;  %p3030_p10 = scmp.eq.s32.totalorder %s2146_s7, 0 }
  0xd0   : > { %1970 = dma.done.wait (%p3030_p10), [#allocation9], 12288   ;;  %p3031_p5 = pmov %p3030_p10 }
  0xd1   : > { %s3032_s5 = sld [smem:[#allocation17_spill]]  ;;  %v2041_v0 = vmov 0.0   ;;  %v414_v1 = vld [vmem:[#allocation8 + $0x8] sm:$0xff]  ;;  %v416_v2 = vld [vmem:[#allocation8 + $0x18] sm:$0xff]  ;;  %v413_v3 = vld [vmem:[#allocation8] sm:$0xff]  ;;  %vm561_vm0 = vcmask 1046528  }
  0xd2   : > { %1972 = vsyncadd (%p3031_p5), [#allocation9], 4294955008  ;;  %1002 = vmatprep.mubr.f32.mxu0 %v2041_v0  ;;  %v1403_v4 = vpack.c.bf16 %v416_v2, %v414_v1  ;;  %v415_v5 = vld [vmem:[#allocation8 + $0x10] sm:$0xff]  ;;  %v418_v6 = vld [vmem:[#allocation8 + $0x28] sm:$0xff]  ;;  %vm594_vm1 = vcmask 1045504   ;;  %vm629_vm2 = vcmask 1040384  }
  0xd3   : > { %v420_v7 = vld [vmem:[#allocation8 + $0x38] sm:$0xff]  ;;  %v1405_v8 = vpack.c.bf16 %v415_v5, %v413_v3  ;;  %v417_v10 = vld [vmem:[#allocation8 + $0x20] sm:$0xff]  ;;  %v419_v11 = vld [vmem:[#allocation8 + $0x30] sm:$0xff]  ;;  %s3033_s14 = sld [smem:[#allocation30_spill]]  ;;  %s2781_s29 = scalar_lea.vmem [#allocation10], %s1385_s13 }
  0xd4   : > { %v1407_v9 = vpack.c.bf16 %v420_v7, %v418_v6  ;;  %v422_v12 = vld [vmem:[#allocation8 + $0x48] sm:$0xff]  ;;  %1404 = vmatprep.subr.bf16.mxu1 %v1403_v4  ;;  %v424_v13 = vld [vmem:[#allocation8 + $0x58] sm:$0xff]  ;;  %v1409_v14 = vpack.c.bf16 %v419_v11, %v417_v10  ;;  %v421_v16 = vld [vmem:[#allocation8 + $0x40] sm:$0xff]  ;;  %s3034_s13 = sld [smem:[#allocation18_spill]]  ;;  %s1211_s18 = sshll.u32 %s2781_s29, 4  ;;  %s2883_s18 = int_to_ptr.vmem [resolvable:$true] %s1211_s18 }
  0xd5   : > { %1406 = vmatpush1.bf16.msra.mxu1 %v1405_v8  ;;  %v1411_v15 = vpack.c.bf16 %v424_v13, %v422_v12  ;;  %v423_v17 = vld [vmem:[#allocation8 + $0x50] sm:$0xff]  ;;  %v426_v18 = vld [vmem:[#allocation8 + $0x68] sm:$0xff]  ;;  %v428_v19 = vld [vmem:[#allocation8 + $0x78] sm:$0xff]  ;;  %s1196_s21 = scalar_lea.sflag [#allocation4], %s2422_s0  ;;  %p3036_p2 = scmp.ne.s32.totalorder %s3013_s16, 0 }
  0xd6   : > { %1408 = vmatprep.subr.bf16.mxu1 %v1407_v9  ;;  %v1413_v20 = vpack.c.bf16 %v423_v17, %v421_v16  ;;  %v1415_v21 = vpack.c.bf16 %v428_v19, %v426_v18  ;;  %v425_v22 = vld [vmem:[#allocation8 + $0x60] sm:$0xff]  ;;  %v427_v23 = vld [vmem:[#allocation8 + $0x70] sm:$0xff]  ;;  %v430_v24 = vld [vmem:[#allocation8 + $0x88] sm:$0xff] }
  0xd7   : > { %p389_p9 = scmp.eq.s32.totalorder %s3032_s5, 0  ;;  %p390_p13 = scmp.eq.s32.totalorder %s3032_s5, 3  ;;  %v432_v25 = vld [vmem:[#allocation8 + $0x98] sm:$0xff]  ;;  %v1417_v26 = vpack.c.bf16 %v427_v23, %v425_v22  ;;  %v478_v27 = vld [vmem:[#allocation8 + $0x208] sm:$0xff]  ;;  %v477_v29 = vld [vmem:[#allocation8 + $0x200] sm:$0xff] }
  0xd8   : > { %v480_v28 = vld [vmem:[#allocation8 + $0x218] sm:$0xff]  ;;  %v1419_v30 = vpack.c.bf16 %v432_v25, %v430_v24  ;;  %v429_v31 = vld [vmem:[#allocation8 + $0x80] sm:$0xff]  ;;  %v431_v32 = vld [vmem:[#allocation8 + $0x90] sm:$0xff]  ;;  %s1392_s28 = sshll.u32 %s3032_s5, 4  ;;  %s2042_s5 = smov [#allocation10]  }
  0xd9   : > { %1410 = vmatpush1.bf16.msra.mxu1 %v1409_v14  ;;  %v1467_v33 = vpack.c.bf16 %v480_v28, %v478_v27  ;;  %v479_v34 = vld [vmem:[#allocation8 + $0x210] sm:$0xff]  ;;  %v434_v35 = vld [vmem:[#allocation8 + $0xa8] sm:$0xff]  ;;  %v436_v36 = vld [vmem:[#allocation8 + $0xb8] sm:$0xff]  ;;  %v1421_v42 = vpack.c.bf16 %v431_v32, %v429_v31  ;;  %s1718_s7 = scalar_select %p389_p9, 0, 255 }
  0xda   : > { %1412 = vmatprep.subr.bf16.mxu1 %v1411_v15  ;;  %v1469_v37 = vpack.c.bf16 %v479_v34, %v477_v29  ;;  %v482_v38 = vld [vmem:[#allocation8 + $0x228] sm:$0xff]  ;;  %v484_v39 = vld [vmem:[#allocation8 + $0x238] sm:$0xff]  ;;  %v481_v40 = vld [vmem:[#allocation8 + $0x220] sm:$0xff]  ;;  %v1423_v47 = vpack.c.bf16 %v436_v36, %v434_v35  ;;  %s1721_s3 = scalar_select %p390_p13, 0, 255 }
  0xdb   : > { %1468 = vmatprep.subr.bf16.mxu0 %v1467_v33  ;;  %v483_v41 = vld [vmem:[#allocation8 + $0x230] sm:$0xff]  ;;  %v433_v43 = vld [vmem:[#allocation8 + $0xa0] sm:$0xff]  ;;  %v1471_v45 = vpack.c.bf16 %v484_v39, %v482_v38  ;;  %v438_v48 = vld [vmem:[#allocation8 + $0xc8] sm:$0xff] }
  0xdc   : > { %v435_v44 = vld [vmem:[#allocation8 + $0xb0] sm:$0xff]  ;;  %1470 = vmatpush1.bf16.msra.mxu0 %v1469_v37  ;;  %v1473_v46 = vpack.c.bf16 %v483_v41, %v481_v40  ;;  %v486_v49 = vld [vmem:[#allocation8 + $0x248] sm:$0xff]  ;;  %v488_v50 = vld [vmem:[#allocation8 + $0x258] sm:$0xff] }
  0xdd   : > { %1414 = vmatpush1.bf16.msra.mxu1 %v1413_v20  ;;  %v440_v51 = vld [vmem:[#allocation8 + $0xd8] sm:$0xff]  ;;  %1472 = vmatprep.subr.bf16.mxu0 %v1471_v45  ;;  %v1475_v52 = vpack.c.bf16 %v488_v50, %v486_v49  ;;  %v485_v53 = vld [vmem:[#allocation8 + $0x240] sm:$0xff]  ;;  %v487_v54 = vld [vmem:[#allocation8 + $0x250] sm:$0xff]  ;;  %v1425_v55 = vpack.c.bf16 %v435_v44, %v433_v43 }
  0xde   : > { %1416 = vmatprep.subr.bf16.mxu1 %v1415_v21  ;;  %v437_v56 = vld [vmem:[#allocation8 + $0xc0] sm:$0xff]  ;;  %v1477_v57 = vpack.c.bf16 %v487_v54, %v485_v53  ;;  %v490_v58 = vld [vmem:[#allocation8 + $0x268] sm:$0xff]  ;;  %v492_v59 = vld [vmem:[#allocation8 + $0x278] sm:$0xff]  ;;  %v1427_v60 = vpack.c.bf16 %v440_v51, %v438_v48 }
  0xdf   : > { %v439_v61 = vld [vmem:[#allocation8 + $0xd0] sm:$0xff]  ;;  %v1479_v62 = vpack.c.bf16 %v492_v59, %v490_v58  ;;  %v489_v63 = vld [vmem:[#allocation8 + $0x260] sm:$0xff]  ;;  %v442_v2 = vld [vmem:[#allocation8 + $0xe8] sm:$0xff] }
  0xe0   : > { %1474 = vmatpush1.bf16.msra.mxu0 %v1473_v46  ;;  %v491_v1 = vld [vmem:[#allocation8 + $0x270] sm:$0xff]  ;;  %v444_v3 = vld [vmem:[#allocation8 + $0xf8] sm:$0xff]  ;;  %v494_v4 = vld [vmem:[#allocation8 + $0x288] sm:$0xff]  ;;  %v1429_v6 = vpack.c.bf16 %v439_v61, %v437_v56 }
  0xe1   : > { %1418 = vmatpush1.bf16.msra.mxu1 %v1417_v26  ;;  %1476 = vmatprep.subr.bf16.mxu0 %v1475_v52  ;;  %v496_v5 = vld [vmem:[#allocation8 + $0x298] sm:$0xff]  ;;  %v441_v7 = vld [vmem:[#allocation8 + $0xe0] sm:$0xff]  ;;  %v443_v8 = vld [vmem:[#allocation8 + $0xf0] sm:$0xff]  ;;  %v1481_v9 = vpack.c.bf16 %v491_v1, %v489_v63  ;;  %v1431_v10 = vpack.c.bf16 %v444_v3, %v442_v2 }
  0xe2   : > { %1420 = vmatprep.subr.bf16.mxu1 %v1419_v30  ;;  %v446_v11 = vld [vmem:[#allocation8 + $0x108] sm:$0xff]  ;;  %v1483_v12 = vpack.c.bf16 %v496_v5, %v494_v4  ;;  %v493_v13 = vld [vmem:[#allocation8 + $0x280] sm:$0xff]  ;;  %v495_v14 = vld [vmem:[#allocation8 + $0x290] sm:$0xff]  ;;  %v1433_v18 = vpack.c.bf16 %v443_v8, %v441_v7 }
  0xe3   : > { %v448_v15 = vld [vmem:[#allocation8 + $0x118] sm:$0xff]  ;;  %v498_v16 = vld [vmem:[#allocation8 + $0x2a8] sm:$0xff]  ;;  %v445_v19 = vld [vmem:[#allocation8 + $0x100] sm:$0xff]  ;;  %v1485_v21 = vpack.c.bf16 %v495_v14, %v493_v13 }
  0xe4   : > { %1478 = vmatpush1.bf16.msra.mxu0 %v1477_v57  ;;  %v500_v17 = vld [vmem:[#allocation8 + $0x2b8] sm:$0xff]  ;;  %v447_v20 = vld [vmem:[#allocation8 + $0x110] sm:$0xff]  ;;  %v1435_v22 = vpack.c.bf16 %v448_v15, %v446_v11  ;;  %v450_v23 = vld [vmem:[#allocation8 + $0x128] sm:$0xff] }
  0xe5   : > { %1422 = vmatpush1.bf16.msra.mxu1 %v1421_v42  ;;  %1480 = vmatprep.subr.bf16.mxu0 %v1479_v62  ;;  %v1487_v24 = vpack.c.bf16 %v500_v17, %v498_v16  ;;  %v497_v25 = vld [vmem:[#allocation8 + $0x2a0] sm:$0xff]  ;;  %v499_v26 = vld [vmem:[#allocation8 + $0x2b0] sm:$0xff]  ;;  %v452_v27 = vld [vmem:[#allocation8 + $0x138] sm:$0xff]  ;;  %v1437_v31 = vpack.c.bf16 %v447_v20, %v445_v19 }
  0xe6   : > { %1424 = vmatprep.subr.bf16.mxu1 %v1423_v47  ;;  %v502_v28 = vld [vmem:[#allocation8 + $0x2c8] sm:$0xff]  ;;  %v504_v29 = vld [vmem:[#allocation8 + $0x2d8] sm:$0xff]  ;;  %v449_v30 = vld [vmem:[#allocation8 + $0x120] sm:$0xff]  ;;  %v1489_v33 = vpack.c.bf16 %v499_v26, %v497_v25  ;;  %v1439_v36 = vpack.c.bf16 %v452_v27, %v450_v23 }
  0xe7   : > { %v451_v32 = vld [vmem:[#allocation8 + $0x130] sm:$0xff]  ;;  %v2459_v34 = vld [vmem:[%s2428_s30] sm:$0xff]  ;;  %v2462_v35 = vld [vmem:[%s2428_s30 + $0x8] sm:$0xff]  ;;  %v1491_v38 = vpack.c.bf16 %v504_v29, %v502_v28 }
  0xe8   : > { %1482 = vmatpush1.bf16.msra.mxu0 %v1481_v9  ;;  %v454_v37 = vld [vmem:[#allocation8 + $0x148] sm:$0xff]  ;;  %v501_v39 = vld [vmem:[#allocation8 + $0x2c0] sm:$0xff]  ;;  %v503_v40 = vld [vmem:[#allocation8 + $0x2d0] sm:$0xff]  ;;  %v562_v41 = vrot.slane %v2459_v34, 1  ;;  %v563_v42 = vrot.slane %v2462_v35, 1  ;;  %v595_v46 = vrot.slane %v2459_v34, 2  ;;  %v1441_v50 = vpack.c.bf16 %v451_v32, %v449_v30 }
  0xe9   : > { %1426 = vmatpush1.bf16.msra.mxu1 %v1425_v55  ;;  %1484 = vmatprep.subr.bf16.mxu0 %v1483_v12  ;;  %v456_v43 = vld [vmem:[#allocation8 + $0x158] sm:$0xff]  ;;  %v506_v44 = vld [vmem:[#allocation8 + $0x2e8] sm:$0xff]  ;;  %v596_v47 = vrot.slane %v2462_v35, 2  ;;  %v453_v51 = vld [vmem:[#allocation8 + $0x140] sm:$0xff]  ;;  %v1493_v52 = vpack.c.bf16 %v503_v40, %v501_v39 }
  0xea   : > { %1428 = vmatprep.subr.bf16.mxu1 %v1427_v60  ;;  %v508_v45 = vld [vmem:[#allocation8 + $0x2f8] sm:$0xff]  ;;  %v2471_v48 = vsel %vm561_vm0, %v562_v41, %v563_v42  ;;  %v633_v49 = vrot.slane %v562_v41, 7  ;;  %v2475_v54 = vld [vmem:[%s2428_s30 + $0x10] sm:$0xff]  ;;  %v1443_v55 = vpack.c.bf16 %v456_v43, %v454_v37  ;;  %v505_v58 = vld [vmem:[#allocation8 + $0x2e0] sm:$0xff]  ;;  %v636_v4 = vrot.slane %v595_v46, 7 }
  0xeb   : > { %v634_v53 = vrot.slane %v2471_v48, 7  ;;  %v455_v56 = vld [vmem:[#allocation8 + $0x150] sm:$0xff]  ;;  %v1495_v57 = vpack.c.bf16 %v508_v45, %v506_v44  ;;  %v597_v60 = vsel %vm594_vm1, %v595_v46, %v596_v47  ;;  %v598_v61 = vrot.slane %v2475_v54, 2  ;;  %v458_v62 = vld [vmem:[#allocation8 + $0x168] sm:$0xff]  ;;  %v460_v63 = vld [vmem:[#allocation8 + $0x178] sm:$0xff] }
  0xec   : > { %1486 = vmatpush1.bf16.msra.mxu0 %v1485_v21  ;;  %v507_v59 = vld [vmem:[#allocation8 + $0x2f0] sm:$0xff]  ;;  %v1445_v2 = vpack.c.bf16 %v455_v56, %v453_v51  ;;  %v637_v5 = vrot.slane %v597_v60, 7  ;;  %v1447_v7 = vpack.c.bf16 %v460_v63, %v458_v62  ;;  %v457_v8 = vld [vmem:[#allocation8 + $0x160] sm:$0xff]  ;;  %v462_v12 = vld [vmem:[#allocation8 + $0x188] sm:$0xff] }
  0xed   : > { %1430 = vmatpush1.bf16.msra.mxu1 %v1429_v6  ;;  %1488 = vmatprep.subr.bf16.mxu0 %v1487_v24  ;;  %v635_v1 = vsel %vm629_vm2, %v633_v49, %v634_v53  ;;  %v1497_v3 = vpack.c.bf16 %v507_v59, %v505_v58  ;;  %v2483_v6 = vld [vmem:[%s2428_s30 + $0x18] sm:$0xff]  ;;  %v459_v9 = vld [vmem:[#allocation8 + $0x170] sm:$0xff]  ;;  %v2489_v17 = vld [vmem:[%s2428_s30 + $0x20] sm:$0xff] }
  0xee   : > { %1432 = vmatprep.subr.bf16.mxu1 %v1431_v10  ;;  %841 = vmatprep.mubr.f32.mxu1 %v635_v1  ;;  %v599_v10 = vsel %vm594_vm1, %v596_v47, %v598_v61  ;;  %v600_v11 = vrot.slane %v2483_v6, 2  ;;  %v464_v13 = vld [vmem:[#allocation8 + $0x198] sm:$0xff]  ;;  %v1449_v14 = vpack.c.bf16 %v459_v9, %v457_v8  ;;  %v638_v15 = vsel %vm629_vm2, %v636_v4, %v637_v5  ;;  %v461_v19 = vld [vmem:[#allocation8 + $0x180] sm:$0xff]  ;;  %v463_v20 = vld [vmem:[#allocation8 + $0x190] sm:$0xff] }
  0xef   : > { %v643_v16 = vrot.slane %v599_v10, 7  ;;  %v466_v23 = vld [vmem:[#allocation8 + $0x1a8] sm:$0xff]  ;;  %v468_v24 = vld [vmem:[#allocation8 + $0x1b8] sm:$0xff]  ;;  %v1453_v25 = vpack.c.bf16 %v463_v20, %v461_v19  ;;  %v465_v30 = vld [vmem:[#allocation8 + $0x1a0] sm:$0xff]  ;;  %v567_v62 = vrot.slane %v2483_v6, 1  ;;  %v631_v10 = vrot.slane %v2459_v34, 7 }
  0xf0   : > { %1490 = vmatpush1.bf16.msra.mxu0 %v1489_v33  ;;  %v601_v21 = vsel %vm594_vm1, %v598_v61, %v600_v11  ;;  %v2496_v28 = vld [vmem:[%s2428_s30 + $0x28] sm:$0xff]  ;;  %v1455_v29 = vpack.c.bf16 %v468_v24, %v466_v23  ;;  %v472_v37 = vld [vmem:[#allocation8 + $0x1d8] sm:$0xff]  ;;  %v471_v39 = vld [vmem:[#allocation8 + $0x1d0] sm:$0xff] }
  0xf1   : > { %1434 = vmatpush1.bf16.msra.mxu1 %v1433_v18  ;;  %1492 = vmatprep.subr.bf16.mxu0 %v1491_v38  ;;  %v1451_v18 = vpack.c.bf16 %v464_v13, %v462_v12  ;;  %v644_v26 = vsel %vm629_vm2, %v637_v5, %v643_v16  ;;  %v649_v27 = vrot.slane %v601_v21, 7  ;;  %v604_v33 = vrot.slane %v2496_v28, 2  ;;  %v469_v38 = vld [vmem:[#allocation8 + $0x1c0] sm:$0xff]  ;;  %v474_v40 = vld [vmem:[#allocation8 + $0x1e8] sm:$0xff]  ;;  %v2503_v41 = vld [vmem:[%s2428_s30 + $0x30] sm:$0xff] }
  0xf2   : > { %1436 = vmatprep.subr.bf16.mxu1 %v1435_v22  ;;  %v602_v22 = vrot.slane %v2489_v17, 2  ;;  %v476_v44 = vld [vmem:[#allocation8 + $0x1f8] sm:$0xff]  ;;  %v606_v47 = vrot.slane %v2503_v41, 2  ;;  %v2509_v49 = vld [vmem:[%s2428_s30 + $0x48] sm:$0xff]  ;;  %v473_v60 = vld [vmem:[#allocation8 + $0x1e0] sm:$0xff] }
  0xf3   : > { %v650_v45 = vsel %vm629_vm2, %v643_v16, %v649_v27  ;;  %v1719_v56 = vld [vmem:[%s329_s10] sm:%s1718_s7]  ;;  %v2519_v58 = vld [vmem:[%s2428_s30 + $0x58] sm:$0xff]  ;;  %v1463_v59 = vpack.c.bf16 %v476_v44, %v474_v40  ;;  %v475_v61 = vld [vmem:[#allocation8 + $0x1f0] sm:$0xff]  ;;  %v579_v1 = vrot.slane %v2509_v49, 1  ;;  %v569_v16 = vrot.slane %v2489_v17, 1  ;;  %s3035_s10 = sld [smem:[#allocation31_spill]] }
  0xf4   : > { %1494 = vmatpush1.bf16.msra.mxu0 %v1493_v52  ;;  %v603_v32 = vsel %vm594_vm1, %v600_v11, %v602_v22  ;;  %v605_v52 = vsel %vm594_vm1, %v602_v22, %v604_v33  ;;  %v2523_v63 = vld [vmem:[%s2428_s30 + $0x38] sm:$0xff]  ;;  %v2530_v5 = vsel %vm594_vm1, %v604_v33, %v606_v47  ;;  %v2534_v8 = vld [vmem:[%s2428_s30 + $0x60] sm:$0xff]  ;;  %v630_v9 = vrot.slane %v1719_v56, 7  ;;  %v2555_v21 = vld [vmem:[%s2428_s30 + $0x68] sm:$0xff]  ;;  %s1877_s7 = sshll.u32 %s2042_s5, 4  ;;  %s1878_s7 = int_to_ptr.vmem [resolvable:$false] %s1877_s7 }
  0xf5   : > { %1438 = vmatpush1.bf16.msra.mxu1 %v1437_v31  ;;  %1496 = vmatprep.subr.bf16.mxu0 %v1495_v57  ;;  %v467_v31 = vld [vmem:[#allocation8 + $0x1b0] sm:$0xff]  ;;  %v655_v46 = vrot.slane %v603_v32, 7  ;;  %v565_v57 = vrot.slane %v2475_v54, 1  ;;  %v661_v4 = vrot.slane %v605_v52, 7  ;;  %v583_v12 = vrot.slane %v2519_v58, 1  ;;  %v2563_v22 = vld [vmem:[%s2428_s30 + $0x40] sm:$0xff]  ;;  %p1880_p11 = scmp.lt.s32.totalorder %s2883_s18, %s1878_s7 }
  0xf6   : > { %1440 = vmatprep.subr.bf16.mxu1 %v1439_v36  ;;  %v470_v36 = vld [vmem:[#allocation8 + $0x1c8] sm:$0xff]  ;;  %v1457_v43 = vpack.c.bf16 %v467_v31, %v465_v30  ;;  %v1465_v13 = vpack.c.bf16 %v475_v61, %v473_v60  ;;  %v667_v34 = vrot.slane %v2530_v5, 7  ;;  %v585_v20 = vrot.slane %v2534_v8, 1  ;;  %v2570_v30 = vld [vmem:[%s2428_s30 + $0x70] sm:$0xff] }
  0xf7   : > { %v1459_v51 = vpack.c.bf16 %v472_v37, %v470_v36  ;;  %v645_v31 = vrot.slane %v2475_v54, 7  ;;  %v587_v36 = vrot.slane %v2555_v21, 1  ;;  %v571_v60 = vrot.slane %v2496_v28, 1 }
  0xf8   : > { %1498 = vmatpush1.bf16.msra.mxu0 %v1497_v3  ;;  %v656_v3 = vsel %vm629_vm2, %v649_v27, %v655_v46  ;;  %v610_v27 = vrot.slane %v2563_v22, 2 }
  0xf9   : > { %1442 = vmatpush1.bf16.msra.mxu1 %v1441_v50  ;;  %v2512_v50 = vld [vmem:[%s2428_s30 + $0x50] sm:$0xff] }
  0xfa   : > { %1444 = vmatprep.subr.bf16.mxu1 %v1443_v55  ;;  %v1461_v55 = vpack.c.bf16 %v471_v39, %v469_v38  ;;  %v2583_v38 = vsel %vm561_vm0, %v567_v62, %v569_v16  ;;  %v668_v39 = vsel %vm629_vm2, %v661_v4, %v667_v34 }
  0xfb   : > { %1003 = vmatmul.mubr.f32.vlgmr.msra.gmra.mrb[0].mxu0 %v638_v15  ;;  %v639_v15 = vrot.slane %v2462_v35, 7  ;;  %v662_v35 = vsel %vm629_vm2, %v655_v46, %v661_v4  ;;  %v589_v46 = vrot.slane %v2570_v30, 1 }
  0xfc   : > { %1008 = vmatprep.mubr.f32.mxu0 %v2041_v0 }
  0xfd   : > { %1446 = vmatpush1.bf16.msra.mxu1 %v1445_v2  ;;  %v581_v2 = vrot.slane %v2512_v50, 1  ;;  %v640_v52 = vsel %vm629_vm2, %v631_v10, %v639_v15  ;;  %v590_v61 = vsel %vm561_vm0, %v587_v36, %v589_v46 }
  0xfe   : > { %1448 = vmatprep.subr.bf16.mxu1 %v1447_v7  ;;  %v608_v7 = vrot.slane %v2523_v63, 2 }
  0xff   : > { %1009 = vmatmul.mubr.f32.gmra.mrb[2].mxu0 %v644_v26  ;;  %v2540_v11 = vsel %vm561_vm0, %v579_v1, %v581_v2  ;;  %v584_v19 = vsel %vm561_vm0, %v581_v2, %v583_v12 }
 0x100   : > { %1014 = vmatprep.mubr.f32.mxu0 %v2041_v0  ;;  %v689_v23 = vrot.slane %v2540_v11, 7  ;;  %v695_v24 = vrot.slane %v584_v19, 7 }
 0x101   : > { %1450 = vmatpush1.bf16.msra.mxu1 %v1449_v14  ;;  %v566_v14 = vsel %vm561_vm0, %v563_v42, %v565_v57  ;;  %v2560_v42 = vsel %vm594_vm1, %v606_v47, %v608_v7  ;;  %v2595_v47 = vld [vmem:[%s2428_s30 + $0x78] sm:$0xff]  ;;  %s1393_s30 = sshll.u32 %s3034_s13, 6 }
 0x102   : > { %1452 = vmatprep.subr.bf16.mxu1 %v1451_v18  ;;  %v2549_v18 = vsel %vm561_vm0, %v565_v57, %v567_v62  ;;  %v641_v26 = vrot.slane %v566_v14, 7  ;;  %v2576_v32 = vsel %vm629_vm2, %v689_v23, %v695_v24  ;;  %v673_v40 = vrot.slane %v2560_v42, 7  ;;  %s1208_s4 = sadd.s32 %s1393_s30, %s1392_s28 }
 0x103   : > { %1015 = vmatmul.mubr.f32.gmra.mrb[4].mxu0 %v650_v45  ;;  %v647_v37 = vrot.slane %v2549_v18, 7  ;;  %v588_v45 = vsel %vm561_vm0, %v585_v20, %v587_v36  ;;  %v646_v57 = vsel %vm629_vm2, %v639_v15, %v645_v31  ;;  %v713_v62 = vrot.slane %v590_v61, 7  ;;  %s1394_s2 = sshll.u32 %s1208_s4, 7 }
 0x104   : > { %1020 = vmatprep.mubr.f32.mxu0 %v2041_v0  ;;  %v707_v56 = vrot.slane %v588_v45, 7  ;;  %v591_v2 = vrot.slane %v2595_v47, 1  ;;  %v624_v14 = vrot.slane %v2595_v47, 2  ;;  %v572_v15 = vsel %vm561_vm0, %v569_v16, %v571_v60  ;;  %s2881_s9 = scalar_lea.hbm %s3035_s10, %s1394_s2 }
 0x105   : > { %1454 = vmatpush1.bf16.msra.mxu1 %v1453_v25  ;;  %v632_v25 = vsel %vm629_vm2, %v630_v9, %v631_v10  ;;  %v648_v48 = vsel %vm629_vm2, %v641_v26, %v647_v37  ;;  %v1722_v9 = vld [vmem:[%s338_s1] sm:%s1721_s3]  ;;  %v573_v18 = vrot.slane %v2503_v41, 1  ;;  %v663_v61 = vrot.slane %v2496_v28, 7  ;;  %s1873_s1 = scalar_lea.vmem %s2883_s18, 2048  ;;  %s1879_s3 = scalar_lea.vmem %s1878_s7, 4096 }
 0x106   : > { %1456 = vmatprep.subr.bf16.mxu1 %v1455_v29  ;;  %v586_v29 = vsel %vm561_vm0, %v583_v12, %v585_v20  ;;  %v2622_v10 = vsel %vm629_vm2, %v707_v56, %v713_v62  ;;  %v622_v12 = vrot.slane %v2570_v30, 2  ;;  %v725_v19 = vrot.slane %v591_v2, 7  ;;  %p1874_p6 = scmp.ne.s32.totalorder %s2883_s18, %s1873_s1  ;;  %p1881_p0 = scmp.lt.s32.totalorder %s1879_s3, %s1873_s1 }
 0x107   : > { %1021 = vmatmul.mubr.f32.gmra.mrb[6].mxu0 %v656_v3  ;;  %v701_v33 = vrot.slane %v586_v29, 7  ;;  %v674_v3 = vsel %vm629_vm2, %v667_v34, %v673_v40  ;;  %v669_v28 = vrot.slane %v2503_v41, 7  ;;  %v675_v41 = vrot.slane %v2523_v63, 7 }
 0x108   : > { %1026 = vmatprep.mubr.f32.mxu0 %v2041_v0  ;;  %v2636_v42 = vsel %vm594_vm1, %v622_v12, %v624_v14  ;;  %p1875_p3 = pnand %p1874_p6, %p3036_p2  ;;  %p1882_p8 = por %p1881_p0, %p1880_p11 }
 0x109   : > { %1458 = vmatpush1.bf16.msra.mxu1 %v1457_v43  ;;  %v612_v43 = vrot.slane %v2509_v49, 2  ;;  %v2590_v44 = vsel %vm629_vm2, %v695_v24, %v701_v33  ;;  %v626_v24 = vrot.slane %v1722_v9, 2 }
 0x10a   : > { %1460 = vmatprep.subr.bf16.mxu1 %v1459_v51  ;;  %v642_v51 = vsel %vm629_vm2, %v634_v53, %v641_v26  ;;  %v2612_v53 = vsel %vm629_vm2, %v701_v33, %v707_v56  ;;  %v616_v33 = vrot.slane %v2519_v58, 2  ;;  %p1876_p7 = pneg %p1875_p3 }
 0x10b   : > { %1027 = vmatmul.mubr.f32.gmra.mrb[8].mxu0 %v662_v35  ;;  %v613_v5 = vsel %vm594_vm1, %v610_v27, %v612_v43  ;;  %v651_v35 = vrot.slane %v2483_v6, 7  ;;  %v659_v6 = vrot.slane %v572_v15, 7  ;;  %v627_v36 = vsel %vm594_vm1, %v624_v14, %v626_v24 }
 0x10c   : > { %1032 = vmatprep.mubr.f32.mxu0 %v2041_v0  ;;  %p1883_p1 = pnand %p1882_p8, %p1876_p7 }
 0x10d   : > { %1462 = vmatpush1.bf16.msra.mxu1 %v1461_v55  ;;  %v611_v55 = vsel %vm594_vm1, %v608_v7, %v610_v27  ;;  %v614_v7 = vrot.slane %v2512_v50, 2  ;;  %v652_v45 = vsel %vm629_vm2, %v645_v31, %v651_v35  ;;  %v618_v31 = vrot.slane %v2534_v8, 2 }
 0x10e   : > { %1464 = vmatprep.subr.bf16.mxu1 %v1463_v59  ;;  %v653_v59 = vrot.slane %v2583_v38, 7  ;;  %v679_v4 = vrot.slane %v611_v55, 7  ;;  %v575_v38 = vrot.slane %v2523_v63, 1 }
 0x10f   : > { %1033 = vmatmul.mubr.f32.gmra.mrb[10].mxu0 %v668_v39  ;;  %v615_v29 = vsel %vm594_vm1, %v612_v43, %v614_v7  ;;  %v721_v39 = vrot.slane %v2636_v42, 7  ;;  %v657_v43 = vrot.slane %v2489_v17, 7  ;;  %v617_v54 = vsel %vm594_vm1, %v614_v7, %v616_v33 }
 0x110   : > { %1038 = vmatprep.mubr.f32.mxu0 %v2041_v0  ;;  %v654_v20 = vsel %vm629_vm2, %v647_v37, %v653_v59  ;;  %v680_v16 = vsel %vm629_vm2, %v673_v40, %v679_v4  ;;  %v574_v37 = vsel %vm561_vm0, %v571_v60, %v573_v18  ;;  %v727_v40 = vrot.slane %v627_v36, 7 }
 0x111   : > { %1466 = vmatpush1.bf16.msra.mxu1 %v1465_v13  ;;  %v592_v13 = vsel %vm561_vm0, %v589_v46, %v591_v2  ;;  %v660_v55 = vsel %vm629_vm2, %v653_v59, %v659_v6  ;;  %v665_v56 = vrot.slane %v574_v37, 7  ;;  %v577_v17 = vrot.slane %v2563_v22, 1 }
 0x112   : > { %v719_v34 = vrot.slane %v592_v13, 7  ;;  %v658_v60 = vsel %vm629_vm2, %v651_v35, %v657_v43  ;;  %v664_v7 = vsel %vm629_vm2, %v657_v43, %v663_v61  ;;  %v705_v42 = vrot.slane %v2534_v8, 7 }
 0x113   : > { %1039 = vmatmul.mubr.f32.gmra.mrb[12].mxu0 %v674_v3  ;;  %v619_v3 = vsel %vm594_vm1, %v616_v33, %v618_v31  ;;  %v723_v8 = vrot.slane %v2595_v47, 7  ;;  %v403_v43 = vlaneseq  ;;  %v401_v47 = vld [vmem:[%s3033_s14] sm:$0x3] }
 0x114   : > { %842 = vmatmul.mubr.f32.vlgmr.msra.gmra.mrb[0].mxu1 %v632_v25  ;;  %1044 = vmatprep.mubr.f32.mxu0 %v2041_v0  ;;  %v685_v25 = vrot.slane %v613_v5, 7  ;;  %v2641_v26 = vsel %vm629_vm2, %v713_v62, %v719_v34  ;;  %v2644_v27 = vsel %vm629_vm2, %v719_v34, %v725_v19  ;;  %v666_v62 = vsel %vm629_vm2, %v659_v6, %v665_v56 }
 0x115   : > { %847 = vmatprep.mubr.f32.mxu1 %v642_v51  ;;  %v691_v51 = vrot.slane %v615_v29, 7  ;;  %v578_v5 = vsel %vm561_vm0, %v575_v38, %v577_v17  ;;  %v703_v13 = vrot.slane %v619_v3, 7  ;;  %v580_v34 = vsel %vm561_vm0, %v577_v17, %v579_v1 }
 0x116   : > { %v686_v46 = vsel %vm629_vm2, %v679_v4, %v685_v25  ;;  %v620_v4 = vrot.slane %v2555_v21, 2  ;;  %v677_v15 = vrot.slane %v578_v5, 7  ;;  %v670_v19 = vsel %vm629_vm2, %v663_v61, %v669_v28 }
 0x117   : > { %1045 = vmatmul.mubr.f32.gmra.mrb[14].mxu0 %v680_v16  ;;  %v692_v59 = vsel %vm629_vm2, %v685_v25, %v691_v51  ;;  %v683_v16 = vrot.slane %v580_v34, 7  ;;  %v676_v1 = vsel %vm629_vm2, %v669_v28, %v675_v41  ;;  %v681_v6 = vrot.slane %v2563_v22, 7 }
 0x118   : > { %848 = vmatmul.mubr.f32.gmra.mrb[2].mxu1 %v640_v52  ;;  %1050 = vmatprep.mubr.f32.mxu0 %v2041_v0  ;;  %v2661_v52 = vsel %vm629_vm2, %v721_v39, %v727_v40  ;;  %v623_v25 = vsel %vm594_vm1, %v620_v4, %v622_v12  ;;  %v687_v12 = vrot.slane %v2509_v49, 7  ;;  %v693_v40 = vrot.slane %v2512_v50, 7 }
 0x119   : > { %853 = vmatprep.mubr.f32.mxu1 %v648_v48  ;;  %v697_v48 = vrot.slane %v617_v54, 7  ;;  %v715_v29 = vrot.slane %v623_v25, 7  ;;  %v684_v33 = vsel %vm629_vm2, %v677_v15, %v683_v16  ;;  %v682_v36 = vsel %vm629_vm2, %v675_v41, %v681_v6 }
 0x11a   : > { %v690_v22 = vsel %vm629_vm2, %v683_v16, %v689_v23  ;;  %v694_v11 = vsel %vm629_vm2, %v687_v12, %v693_v40  ;;  %v699_v23 = vrot.slane %v2519_v58, 7  ;;  %v717_v58 = vrot.slane %v2570_v30, 7 }
 0x11b   : > { %1051 = vmatmul.mubr.f32.gmra.mrb[16].mxu0 %v686_v46  ;;  %v698_v9 = vsel %vm629_vm2, %v691_v51, %v697_v48  ;;  %v722_v49 = vsel %vm629_vm2, %v715_v29, %v721_v39  ;;  %v711_v39 = vrot.slane %v2555_v21, 7  ;;  %v404_v30 = vshrl.u32 %v403_v43, 7 }
 0x11c   : > { %854 = vmatmul.mubr.f32.gmra.mrb[4].mxu1 %v646_v57  ;;  %v576_v57 = vsel %vm561_vm0, %v573_v18, %v575_v38  ;;  %1056 = vmatprep.mubr.f32.mxu0 %v2041_v0  ;;  %v621_v18 = vsel %vm594_vm1, %v618_v31, %v620_v4  ;;  %v688_v38 = vsel %vm629_vm2, %v681_v6, %v687_v12 }
 0x11d   : > { %859 = vmatprep.mubr.f32.mxu1 %v654_v20  ;;  %v671_v2 = vrot.slane %v576_v57, 7  ;;  %v704_v20 = vsel %vm629_vm2, %v697_v48, %v703_v13  ;;  %v709_v35 = vrot.slane %v621_v18, 7  ;;  %v700_v50 = vsel %vm629_vm2, %v693_v40, %v699_v23 }
 0x11e   : > { %v409_v54 = vsub.s32 1, %v404_v30 }
 0x11f   : > { %1057 = vmatmul.mubr.f32.gmra.mrb[18].mxu0 %v692_v59  ;;  %v672_v14 = vsel %vm629_vm2, %v665_v56, %v671_v2  ;;  %v678_v24 = vsel %vm629_vm2, %v671_v2, %v677_v15  ;;  %v710_v63 = vsel %vm629_vm2, %v703_v13, %v709_v35  ;;  %v716_v37 = vsel %vm629_vm2, %v709_v35, %v715_v29 }
 0x120   : > { %860 = vmatmul.mubr.f32.gmra.mrb[6].mxu1 %v652_v45  ;;  %1062 = vmatprep.mubr.f32.mxu0 %v2041_v0  ;;  %v2735_v17 = vrot.slane %v401_v47, %v409_v54 }
 0x121   : > { %865 = vmatprep.mubr.f32.mxu1 %v660_v55 }
 0x123   : > { %1063 = vmatmul.mubr.f32.gmra.mrb[20].mxu0 %v698_v9 }
 0x124   : > { %866 = vmatmul.mubr.f32.gmra.mrb[8].mxu1 %v658_v60  ;;  %1068 = vmatprep.mubr.f32.mxu0 %v2041_v0 }
 0x125   : > { %871 = vmatprep.mubr.f32.mxu1 %v666_v62 }
 0x127   : > { %1069 = vmatmul.mubr.f32.gmra.mrb[22].mxu0 %v704_v20 }
 0x128   : > { %872 = vmatmul.mubr.f32.gmra.mrb[10].mxu1 %v664_v7  ;;  %1074 = vmatprep.mubr.f32.mxu0 %v2041_v0 }
 0x129   : > { %877 = vmatprep.mubr.f32.mxu1 %v672_v14 }
 0x12b   : > { %1075 = vmatmul.mubr.f32.gmra.mrb[24].mxu0 %v710_v63 }
 0x12c   : > { %878 = vmatmul.mubr.f32.gmra.mrb[12].mxu1 %v670_v19  ;;  %1080 = vmatprep.mubr.f32.mxu0 %v2041_v0 }
 0x12d   : > { %883 = vmatprep.mubr.f32.mxu1 %v678_v24 }
 0x12f   : > { %1081 = vmatmul.mubr.f32.gmra.mrb[26].mxu0 %v716_v37 }
 0x130   : > { %884 = vmatmul.mubr.f32.gmra.mrb[14].mxu1 %v676_v1  ;;  %1086 = vmatprep.mubr.f32.mxu0 %v2041_v0 }
 0x131   : > { %889 = vmatprep.mubr.f32.mxu1 %v684_v33 }
 0x133   : > { %1087 = vmatmul.mubr.f32.gmra.mrb[28].mxu0 %v722_v49 }
 0x134   : > { %890 = vmatmul.mubr.f32.gmra.mrb[16].mxu1 %v682_v36  ;;  %1092 = vmatprep.mubr.f32.mxu0 %v2041_v0  ;;  %v712_v0 = vsel %vm629_vm2, %v705_v42, %v711_v39 }
 0x135   : > { %895 = vmatprep.mubr.f32.mxu1 %v690_v22 }
 0x137   : > { %1093 = vmatmul.mubr.f32.gmra.mrb[30].mxu0 %v2661_v52 }
 0x138   : > { %896 = vmatmul.mubr.f32.gmra.mrb[18].mxu1 %v688_v38 }
 0x139   : > { %901 = vmatprep.mubr.f32.mxu1 %v2576_v32  ;;  %v706_v32 = vsel %vm629_vm2, %v699_v23, %v705_v42 }
 0x13c   : > { %902 = vmatmul.mubr.f32.gmra.mrb[20].mxu1 %v694_v11 }
 0x13d   : > { %907 = vmatprep.mubr.f32.mxu1 %v2590_v44  ;;  %v718_v44 = vsel %vm629_vm2, %v711_v39, %v717_v58 }
 0x140   : > { %908 = vmatmul.mubr.f32.gmra.mrb[22].mxu1 %v700_v50 }
 0x141   : > { %913 = vmatprep.mubr.f32.mxu1 %v2612_v53  ;;  %v724_v53 = vsel %vm629_vm2, %v717_v58, %v723_v8 }
 0x144   : > { %914 = vmatmul.mubr.f32.gmra.mrb[24].mxu1 %v706_v32 }
 0x145   : > { %919 = vmatprep.mubr.f32.mxu1 %v2622_v10 }
 0x148   : > { %920 = vmatmul.mubr.f32.gmra.mrb[26].mxu1 %v712_v0 }
 0x149   : > { %925 = vmatprep.mubr.f32.mxu1 %v2641_v26  ;;  %v405_v26 = vsub.s32 0, %v404_v30 }
 0x14b   : > { %v2733_v31 = vrot.slane %v401_v47, %v405_v26 }
 0x14c   : > { %926 = vmatmul.mubr.f32.gmra.mrb[28].mxu1 %v718_v44 }
 0x14d   : > { %931 = vmatprep.mubr.f32.mxu1 %v2644_v27 }
 0x150   : > { %932 = vmatmul.mubr.f32.gmra.mrb[30].mxu1 %v724_v53 }
 0x1ce   : > { %v1004_v21 = vpop.f32.mrb[0].mxu0 }
 0x1cf   : > { %v1006_v45 = vpop.f32.mrb[1].mxu0 }
 0x1d2   : > { %v1010_v10 = vpop.f32.mrb[2].mxu0 }
 0x1d3   : > { %v1012_v46 = vpop.f32.mrb[3].mxu0 }
 0x1d6   : > { %v1016_v51 = vpop.f32.mrb[4].mxu0 }
 0x1d7   : > { %v1018_v52 = vpop.f32.mrb[5].mxu0 }
 0x1da   : > { %v1022_v55 = vpop.f32.mrb[6].mxu0 }
 0x1db   : > { %v1024_v56 = vpop.f32.mrb[7].mxu0 }
 0x1de   : > { %v1028_v27 = vpop.f32.mrb[8].mxu0 }
 0x1df   : > { %v1030_v57 = vpop.f32.mrb[9].mxu0 }
 0x1e2   : > { %v1034_v61 = vpop.f32.mrb[10].mxu0 }
 0x1e3   : > { %v1036_v62 = vpop.f32.mrb[11].mxu0 }
 0x1e6   : > { %v2739_v7 = vpop.f32.mrb[12].mxu0 }
 0x1e7   : > { %v843_v60 = vpop.f32.mrb[0].mxu1  ;;  %v2742_v13 = vpop.f32.mrb[13].mxu0 }
 0x1e8   : > { %v844_v59 = vadd.f32 %v843_v60, %v2733_v31  ;;  %v845_v48 = vpop.f32.mrb[1].mxu1 }
 0x1e9   : > { %v846_v2 = vadd.f32 %v845_v48, %v2735_v17 }
 0x1ea   : > { %v1005_v3 = vadd.f32 %v1004_v21, %v844_v59  ;;  %v2745_v41 = vpop.f32.mrb[14].mxu0 }
 0x1eb   : > { %v1007_v4 = vadd.f32 %v1006_v45, %v846_v2  ;;  %v849_v5 = vpop.f32.mrb[2].mxu1  ;;  %v2748_v24 = vpop.f32.mrb[15].mxu0 }
 0x1ec   : > { %v850_v28 = vadd.f32 %v849_v5, %v2733_v31  ;;  %v851_v9 = vpop.f32.mrb[3].mxu1 }
 0x1ed   : > { %v1099_v14 = vmul.f32 0.5, %v1007_v4  ;;  %v852_v15 = vadd.f32 %v851_v9, %v2735_v17 }
 0x1ee   : > { %v1011_v18 = vadd.f32 %v1010_v10, %v850_v28  ;;  %v2753_v29 = vpop.f32.mrb[16].mxu0 }
 0x1ef   : > { %1723 = vtanh.f32 %v1099_v14  ;;  %v1013_v34 = vadd.f32 %v1012_v46, %v852_v15  ;;  %v855_v19 = vpop.f32.mrb[4].mxu1  ;;  %v2756_v12 = vpop.f32.mrb[17].mxu0 }
 0x1f0   : > { %v856_v20 = vadd.f32 %v855_v19, %v2733_v31  ;;  %v857_v35 = vpop.f32.mrb[5].mxu1 }
 0x1f1   : > { %v1100_v16 = vmul.f32 0.5, %v1013_v34  ;;  %v858_v25 = vadd.f32 %v857_v35, %v2735_v17 }
 0x1f2   : > { %v2751_v1 = vadd.f32 %v1016_v51, %v856_v20  ;;  %v2761_v11 = vpop.f32.mrb[18].mxu0 }
 0x1f3   : > { %1725 = vtanh.f32 %v1100_v16  ;;  %v1019_v6 = vadd.f32 %v1018_v52, %v858_v25  ;;  %v861_v63 = vpop.f32.mrb[6].mxu1  ;;  %v2764_v42 = vpop.f32.mrb[19].mxu0 }
 0x1f4   : > { %v862_v33 = vadd.f32 %v861_v63, %v2733_v31  ;;  %v863_v36 = vpop.f32.mrb[7].mxu1 }
 0x1f5   : > { %v1101_v37 = vmul.f32 0.5, %v1019_v6  ;;  %v864_v22 = vadd.f32 %v863_v36, %v2735_v17 }
 0x1f6   : > { %v2759_v38 = vadd.f32 %v1022_v55, %v862_v33  ;;  %v2769_v21 = vpop.f32.mrb[20].mxu0 }
 0x1f7   : > { %1727 = vtanh.f32 %v1101_v37  ;;  %v1025_v40 = vadd.f32 %v1024_v56, %v864_v22  ;;  %v867_v49 = vpop.f32.mrb[8].mxu1  ;;  %v2772_v46 = vpop.f32.mrb[21].mxu0 }
 0x1f8   : > { %v868_v23 = vadd.f32 %v867_v49, %v2733_v31  ;;  %v869_v50 = vpop.f32.mrb[9].mxu1 }
 0x1f9   : > { %v1724_v32 = vpop.eup %1723  ;;  %v1102_v39 = vmul.f32 0.5, %v1025_v40  ;;  %v870_v0 = vadd.f32 %v869_v50, %v2735_v17 }
 0x1fa   : > { %v1131_v58 = vmul.f32 0.5, %v1724_v32  ;;  %v2767_v44 = vadd.f32 %v1028_v27, %v868_v23  ;;  %v2777_v27 = vpop.f32.mrb[22].mxu0 }
 0x1fb   : > { %1729 = vtanh.f32 %v1102_v39  ;;  %v1031_v8 = vadd.f32 %v1030_v57, %v870_v0  ;;  %v873_v53 = vpop.f32.mrb[10].mxu1  ;;  %v2785_v48 = vpop.f32.mrb[23].mxu0 }
 0x1fc   : > { %v1147_v45 = vadd.f32 0.5, %v1131_v58  ;;  %v874_v10 = vadd.f32 %v873_v53, %v2733_v31  ;;  %v875_v43 = vpop.f32.mrb[11].mxu1 }
 0x1fd   : > { %v1726_v51 = vpop.eup %1725  ;;  %v1103_v30 = vmul.f32 0.5, %v1031_v8  ;;  %v876_v52 = vadd.f32 %v875_v43, %v2735_v17 }
 0x1fe   : > { %v1163_v55 = vmul.f32 %v1147_v45, %v1005_v3  ;;  %v1132_v26 = vmul.f32 0.5, %v1726_v51  ;;  %v2775_v56 = vadd.f32 %v1034_v61, %v874_v10  ;;  %v2792_v14 = vpop.f32.mrb[24].mxu0 }
 0x1ff   : > { %1731 = vtanh.f32 %v1103_v30  ;;  %v1037_v47 = vadd.f32 %v1036_v62, %v876_v52  ;;  %v879_v54 = vpop.f32.mrb[12].mxu1  ;;  %v2796_v20 = vpop.f32.mrb[25].mxu0 }
 0x200   : > { %1179 = vst [vmem:[%s2781_s29] sm:$0xff] %v1163_v55  ;;  %v1148_v57 = vadd.f32 0.5, %v1132_v26  ;;  %v880_v60 = vadd.f32 %v879_v54, %v2733_v31  ;;  %v881_v59 = vpop.f32.mrb[13].mxu1 }
 0x201   : > { %v1728_v2 = vpop.eup %1727  ;;  %v1104_v61 = vmul.f32 0.5, %v1037_v47  ;;  %v882_v3 = vadd.f32 %v881_v59, %v2735_v17 }
 0x202   : > { %v1164_v62 = vmul.f32 %v1148_v57, %v1011_v18  ;;  %v1133_v4 = vmul.f32 0.5, %v1728_v2  ;;  %v2789_v5 = vadd.f32 %v2739_v7, %v880_v60  ;;  %v2804_v33 = vpop.f32.mrb[26].mxu0 }
 0x203   : > { %1733 = vtanh.f32 %v1104_v61  ;;  %v1043_v28 = vadd.f32 %v2742_v13, %v882_v3  ;;  %v885_v9 = vpop.f32.mrb[14].mxu1  ;;  %v2808_v40 = vpop.f32.mrb[27].mxu0 }
 0x204   : > { %1180 = vst [vmem:[%s2781_s29 + $0x8] sm:$0xff] %v1164_v62  ;;  %v1149_v15 = vadd.f32 0.5, %v1133_v4  ;;  %v886_v34 = vadd.f32 %v885_v9, %v2733_v31  ;;  %v887_v19 = vpop.f32.mrb[15].mxu1 }
 0x205   : > { %v1730_v35 = vpop.eup %1729  ;;  %v1105_v18 = vmul.f32 0.5, %v1043_v28  ;;  %v888_v16 = vadd.f32 %v887_v19, %v2735_v17 }
 0x206   : > { %v1165_v7 = vmul.f32 %v1149_v15, %v2751_v1  ;;  %v1134_v25 = vmul.f32 0.5, %v1730_v35  ;;  %v2801_v13 = vadd.f32 %v2745_v41, %v886_v34  ;;  %v2816_v0 = vpop.f32.mrb[28].mxu0 }
 0x207   : > { %1735 = vtanh.f32 %v1105_v18  ;;  %v1049_v6 = vadd.f32 %v2748_v24, %v888_v16  ;;  %v891_v63 = vpop.f32.mrb[16].mxu1  ;;  %v2820_v45 = vpop.f32.mrb[29].mxu0 }
 0x208   : > { %1181 = vst [vmem:[%s2781_s29 + $0x10] sm:$0xff] %v1165_v7  ;;  %v1150_v36 = vadd.f32 0.5, %v1134_v25  ;;  %v892_v37 = vadd.f32 %v891_v63, %v2733_v31  ;;  %v893_v22 = vpop.f32.mrb[17].mxu1 }
 0x209   : > { %v1732_v49 = vpop.eup %1731  ;;  %v1106_v1 = vmul.f32 0.5, %v1049_v6  ;;  %v894_v23 = vadd.f32 %v893_v22, %v2735_v17 }
 0x20a   : > { %v1166_v41 = vmul.f32 %v1150_v36, %v2759_v38  ;;  %v1135_v50 = vmul.f32 0.5, %v1732_v49  ;;  %v2813_v24 = vadd.f32 %v2753_v29, %v892_v37  ;;  %v2828_v55 = vpop.f32.mrb[30].mxu0 }
 0x20b   : > { %1737 = vtanh.f32 %v1106_v1  ;;  %v1055_v32 = vadd.f32 %v2756_v12, %v894_v23  ;;  %v897_v39 = vpop.f32.mrb[18].mxu1  ;;  %v2832_v57 = vpop.f32.mrb[31].mxu0 }
 0x20c   : > { %1182 = vst [vmem:[%s2781_s29 + $0x18] sm:$0xff] %v1166_v41  ;;  %v1151_v58 = vadd.f32 0.5, %v1135_v50  ;;  %v898_v8 = vadd.f32 %v897_v39, %v2733_v31  ;;  %v899_v53 = vpop.f32.mrb[19].mxu1 }
 0x20d   : > { %v1734_v10 = vpop.eup %1733  ;;  %v1107_v38 = vmul.f32 0.5, %v1055_v32  ;;  %v900_v43 = vadd.f32 %v899_v53, %v2735_v17 }
 0x20e   : > { %v1167_v29 = vmul.f32 %v1151_v58, %v2767_v44  ;;  %v1136_v51 = vmul.f32 0.5, %v1734_v10  ;;  %v2825_v12 = vadd.f32 %v2761_v11, %v898_v8 }
 0x20f   : > { %1739 = vtanh.f32 %v1107_v38  ;;  %v1061_v30 = vadd.f32 %v2764_v42, %v900_v43  ;;  %v903_v52 = vpop.f32.mrb[20].mxu1 }
 0x210   : > { %1183 = vst [vmem:[%s2781_s29 + $0x20] sm:$0xff] %v1167_v29  ;;  %v1152_v26 = vadd.f32 0.5, %v1136_v51  ;;  %v904_v47 = vadd.f32 %v903_v52, %v2733_v31  ;;  %v905_v54 = vpop.f32.mrb[21].mxu1 }
 0x211   : > { %v1736_v60 = vpop.eup %1735  ;;  %v1108_v44 = vmul.f32 0.5, %v1061_v30  ;;  %v906_v59 = vadd.f32 %v905_v54, %v2735_v17 }
 0x212   : > { %v1168_v11 = vmul.f32 %v1152_v26, %v2775_v56  ;;  %v1137_v2 = vmul.f32 0.5, %v1736_v60  ;;  %v2837_v42 = vadd.f32 %v2769_v21, %v904_v47 }
 0x213   : > { %1741 = vtanh.f32 %v1108_v44  ;;  %v1067_v61 = vadd.f32 %v2772_v46, %v906_v59  ;;  %v909_v3 = vpop.f32.mrb[22].mxu1 }
 0x214   : > { %1184 = vst [vmem:[%s2781_s29 + $0x28] sm:$0xff] %v1168_v11  ;;  %v1153_v62 = vadd.f32 0.5, %v1137_v2  ;;  %v910_v4 = vadd.f32 %v909_v3, %v2733_v31  ;;  %v911_v28 = vpop.f32.mrb[23].mxu1 }
 0x215   : > { %v1738_v9 = vpop.eup %1737  ;;  %v1109_v15 = vmul.f32 0.5, %v1067_v61  ;;  %v912_v34 = vadd.f32 %v911_v28, %v2735_v17 }
 0x216   : > { %v1169_v56 = vmul.f32 %v1153_v62, %v2789_v5  ;;  %v1138_v19 = vmul.f32 0.5, %v1738_v9  ;;  %v1071_v21 = vadd.f32 %v2777_v27, %v910_v4 }
 0x217   : > { %1743 = vtanh.f32 %v1109_v15  ;;  %v1073_v35 = vadd.f32 %v2785_v48, %v912_v34  ;;  %v915_v46 = vpop.f32.mrb[24].mxu1 }
 0x218   : > { %1185 = vst [vmem:[%s2781_s29 + $0x30] sm:$0xff] %v1169_v56  ;;  %v1154_v18 = vadd.f32 0.5, %v1138_v19  ;;  %v916_v16 = vadd.f32 %v915_v46, %v2733_v31  ;;  %v917_v7 = vpop.f32.mrb[25].mxu1 }
 0x219   : > { %v1740_v25 = vpop.eup %1739  ;;  %v1110_v6 = vmul.f32 0.5, %v1073_v35  ;;  %v918_v63 = vadd.f32 %v917_v7, %v2735_v17 }
 0x21a   : > { %v1170_v36 = vmul.f32 %v1154_v18, %v2801_v13  ;;  %v1139_v5 = vmul.f32 0.5, %v1740_v25  ;;  %v1077_v37 = vadd.f32 %v2792_v14, %v916_v16 }
 0x21b   : > { %1745 = vtanh.f32 %v1110_v6  ;;  %v1079_v27 = vadd.f32 %v2796_v20, %v918_v63  ;;  %v921_v48 = vpop.f32.mrb[26].mxu1 }
 0x21c   : > { %1186 = vst [vmem:[%s2781_s29 + $0x38] sm:$0xff] %v1170_v36  ;;  %v1155_v22 = vadd.f32 0.5, %v1139_v5  ;;  %v922_v49 = vadd.f32 %v921_v48, %v2733_v31  ;;  %v923_v1 = vpop.f32.mrb[27].mxu1 }
 0x21d   : > { %v1742_v23 = vpop.eup %1741  ;;  %v1111_v41 = vmul.f32 0.5, %v1079_v27  ;;  %v924_v50 = vadd.f32 %v923_v1, %v2735_v17 }
 0x21e   : > { %v1171_v32 = vmul.f32 %v1155_v22, %v2813_v24  ;;  %v1140_v13 = vmul.f32 0.5, %v1742_v23  ;;  %v1083_v39 = vadd.f32 %v2804_v33, %v922_v49 }
 0x21f   : > { %1747 = vtanh.f32 %v1111_v41  ;;  %v1085_v14 = vadd.f32 %v2808_v40, %v924_v50  ;;  %v927_v20 = vpop.f32.mrb[28].mxu1 }
 0x220   : > { %1187 = vst [vmem:[%s2781_s29 + $0x40] sm:$0xff] %v1171_v32  ;;  %v1156_v58 = vadd.f32 0.5, %v1140_v13  ;;  %v928_v8 = vadd.f32 %v927_v20, %v2733_v31  ;;  %v929_v53 = vpop.f32.mrb[29].mxu1 }
 0x221   : > { %v1744_v10 = vpop.eup %1743  ;;  %v1112_v38 = vmul.f32 0.5, %v1085_v14  ;;  %v930_v43 = vadd.f32 %v929_v53, %v2735_v17 }
 0x222   : > { %v1172_v29 = vmul.f32 %v1156_v58, %v2825_v12  ;;  %v1141_v24 = vmul.f32 0.5, %v1744_v10  ;;  %v1089_v51 = vadd.f32 %v2816_v0, %v928_v8 }
 0x223   : > { %1749 = vtanh.f32 %v1112_v38  ;;  %v1091_v33 = vadd.f32 %v2820_v45, %v930_v43  ;;  %v933_v40 = vpop.f32.mrb[30].mxu1 }
 0x224   : > { %1188 = vst [vmem:[%s2781_s29 + $0x48] sm:$0xff] %v1172_v29  ;;  %v1157_v30 = vadd.f32 0.5, %v1141_v24  ;;  %v934_v52 = vadd.f32 %v933_v40, %v2733_v31  ;;  %v935_v26 = vpop.f32.mrb[31].mxu1 }
 0x225   : > { %v1746_v47 = vpop.eup %1745  ;;  %v1113_v54 = vmul.f32 0.5, %v1091_v33  ;;  %v936_v60 = vadd.f32 %v935_v26, %v2735_v17 }
 0x226   : > { %v1173_v12 = vmul.f32 %v1157_v30, %v2837_v42  ;;  %v1142_v44 = vmul.f32 0.5, %v1746_v47  ;;  %v1095_v0 = vadd.f32 %v2828_v55, %v934_v52 }
 0x227   : > { %1751 = vtanh.f32 %v1113_v54  ;;  %v1097_v45 = vadd.f32 %v2832_v57, %v936_v60 }
 0x228   : > { %1189 = vst [vmem:[%s2781_s29 + $0x50] sm:$0xff] %v1173_v12  ;;  %v1158_v59 = vadd.f32 0.5, %v1142_v44 }
 0x229   : > { %v1748_v31 = vpop.eup %1747  ;;  %v1114_v11 = vmul.f32 0.5, %v1097_v45 }
 0x22a   : > { %v1174_v2 = vmul.f32 %v1158_v59, %v1071_v21  ;;  %v1143_v61 = vmul.f32 0.5, %v1748_v31 }
 0x22b   : > { %1753 = vtanh.f32 %v1114_v11 }
 0x22c   : > { %1190 = vst [vmem:[%s2781_s29 + $0x58] sm:$0xff] %v1174_v2  ;;  %v1159_v17 = vadd.f32 0.5, %v1143_v61 }
 0x22d   : > { %v1750_v42 = vpop.eup %1749 }
 0x22e   : > { %v1175_v3 = vmul.f32 %v1159_v17, %v1077_v37  ;;  %v1144_v62 = vmul.f32 0.5, %v1750_v42 }
 0x230   : > { %1191 = vst [vmem:[%s2781_s29 + $0x60] sm:$0xff] %v1175_v3  ;;  %v1160_v55 = vadd.f32 0.5, %v1144_v62 }
 0x231   : > { %v1752_v57 = vpop.eup %1751 }
 0x232   : > { %v1176_v4 = vmul.f32 %v1160_v55, %v1083_v39  ;;  %v1145_v28 = vmul.f32 0.5, %v1752_v57 }
 0x234   : > { %1192 = vst [vmem:[%s2781_s29 + $0x68] sm:$0xff] %v1176_v4  ;;  %v1161_v9 = vadd.f32 0.5, %v1145_v28 }
 0x235   : > { %v1754_v15 = vpop.eup %1753 }
 0x236   : > { %v1177_v34 = vmul.f32 %v1161_v9, %v1089_v51  ;;  %v1146_v56 = vmul.f32 0.5, %v1754_v15 }
 0x238   : > { %1193 = vst [vmem:[%s2781_s29 + $0x70] sm:$0xff] %v1177_v34  ;;  %v1162_v19 = vadd.f32 0.5, %v1146_v56 }
 0x23a   : > { %v1178_v21 = vmul.f32 %v1162_v19, %v1095_v0 }
 0x23c   : > { %1194 = vst [vmem:[%s2781_s29 + $0x78] sm:$0xff] %v1178_v21 }
 0x23d   : > { %1886 = shalt.err (!%p1883_p1)
}
 0x23e   : > { %s1887_s11 = scalar_lea.hbm %s2881_s9, 2048  ;;  %s1891_s29 = scalar_lea.hbm %s3035_s10, 16384 }
 0x23f   : > { %p1888_p4 = scmp.ne.s32.totalorder %s2881_s9, %s1887_s11  ;;  %p1892_p5 = scmp.lt.u32.totalorder %s2881_s9, %s3035_s10 }
 0x240   : > { %p1893_p9 = scmp.lt.u32.totalorder %s1891_s29, %s1887_s11  ;;  %p1895_p6 = scmp.lt.u32.totalorder %s1887_s11, %s2881_s9 }
 0x241   : > { %p1889_p12 = pnand %p1888_p4, %p3036_p2 }
 0x242   : > { %p1894_p13 = por %p1893_p9, %p1892_p5 }
 0x243   : > { %p1890_p10 = pneg %p1889_p12 }
 0x244   : > { %p1896_p3 = por %p1895_p6, %p1894_p13 }
 0x246   : > { %p1897_p7 = pnand %p1896_p3, %p1890_p10 }
 0x248   : > { %1900 = shalt.err (!%p1897_p7)
}
 0x249   : > { %s2043_s30 = smov 128   ;;  %s2044_s4 = smov 8  }
 0x24a   : > { %1573 = dma.vmem_to_hbm [thread:$0]  (%p3036_p2), %s2883_s18, 2048, %s2881_s9, %s1196_s21, %s2043_s30, %s2043_s30, %s2044_s4  }
 0x24b PF: > { %p1596_p11 = scmp.ge.s32.totalorder %s2031_s6, 2  ;;  %s1226_s2 = sand.u32 1, %s2003_s24  }
 0x24c   : > { %p3037_p0 = scmp.ne.s32.totalorder %s3014_s27, 0  ;;  %s1227_s8 = scalar_lea.sflag [#allocation4], %s1226_s2 }
 0x24e   : > { %p1590_p8 = pnand %p1596_p11, %p3037_p0 }
 0x250   : > { %1974 = dma.done.wait (!%p1590_p8), %s1227_s8, 2048  }
 0x251   : > { %1976 = vsyncadd (!%p1590_p8), %s1227_s8, 4294965248  ;;  %s25_s6 = sadd.s32 1, %s2031_s6   ;;  %s3039_s21 = sld [smem:[#allocation16_spill]] }
 0x252   : > { %p2915_p1 = scmp.ge.s32.totalorder %s25_s6, 10   ;;  %s3040_s16 = sld [smem:[#allocation24_spill]] }
 0x253   : > { %s3041_s0 = sld [smem:[#allocation25_spill]]  ;;  %s3042_s27 = sld [smem:[#allocation19_spill]] }
 0x254   : > { %s3043_s28 = sld [smem:[#allocation20_spill]]  ;;  %s3044_s29 = sld [smem:[#allocation21_spill]] }
 0x255   : > { %s3045_s30 = sld [smem:[#allocation22_spill]]  ;;  %s3047_s18 = smov %s1983_s19 }
 0x256   : > { %s3048_s19 = smov %s1987_s20  ;;  %s3049_s20 = smov %s2378_s12 }
 0x257   : > { %s3050_s22 = smov %s1999_s23  ;;  %s3052_s24 = smov %s2007_s25 }
 0x258   : > { %s3051_s23 = smov %s3040_s16  ;;  %s3053_s25 = smov %s2011_s26 }
 0x259   : > { %s3054_s26 = smov %s3041_s0  ;;  %24 = sbr.rel (!%p2915_p1) target bundleno = 20 (0x14), region = 115 }
 0x260   :  { %1232 = vsyncpa [#allocation3], 1 }
 0x261   :  { %1234 = vsyncpa [#allocation3 + $0x1], 1 }
 0x262   :  { %1235 = vsyncpa [#allocation6], 1 }
 0x263   :  { %1237 = vsyncpa [#allocation6 + $0x1], 1 }
 0x264   :  { %1238 = vsyncpa [#allocation9], 1 }
 0x265   :  { %1239 = vsyncpa [#allocation4], 1 }
 0x266   :  { %1241 = vsyncpa [#allocation4 + $0x1], 1 }

</bundles_post_ra>
